<compile_context>
chip_gen: v7x
topology: tpu7x:2x2x1
jax: 0.10.0
libtpu: 0.0.40
codegen_flags: <defaults>
</compile_context>

<pallas_src>
import math

import numpy as np

import jax
import jax.numpy as jnp
from jax.experimental import pallas as pl
from jax.experimental.pallas import tpu as pltpu


def _round_up(x, m):
    return ((x + m - 1) // m) * m


def _make_kernel(H, W, C, tpb, n_kblocks):
    """Build the kernel body; closes over the static conv geometry."""
    taps = [(dy, dx) for dy in (-1, 0, 1) for dx in (-1, 0, 1)]

    def kernel(x_ref, w1_ref, b1_ref, w2_ref, b2_ref, out_ref):
        # x_ref   : (Mb, Cp) f32   lane-dense flat activation block (whole boards)
        # w{1,2}  : (Kp, Cp) bf16  tap-packed weights, BN scale folded in
        # b{1,2}  : (1, Cp)  f32   folded BN shift
        # out_ref : (Mb, Cp) f32
        M = x_ref.shape[0]
        x32 = x_ref[...]                      # f32; also the residual term

        # ---- per-tap border-validity masks, generated in-kernel ------------
        r = jax.lax.broadcasted_iota(jnp.int32, (M, 1), 0)
        if (W & (W - 1)) == 0 and (H & (H - 1)) == 0:
            # power-of-two boards (8x8 Leela): pure bitwise ops
            col = jnp.bitwise_and(r, W - 1)
            row = jnp.bitwise_and(jnp.right_shift(r, W.bit_length() - 1), H - 1)
        else:
            # general fallback (not exercised for 8x8 boards)
            p = jnp.remainder(r, H * W)
            col = jnp.remainder(p, W)
            row = p // W

        masks = {}
        for dy, dx in taps:
            parts = []
            if dy == -1:
                parts.append(row >= 1)
            if dy == 1:
                parts.append(row <= H - 2)
            if dx == -1:
                parts.append(col >= 1)
            if dx == 1:
                parts.append(col <= W - 2)
            if parts:
                m = parts[0]
                for q in parts[1:]:
                    m = jnp.logical_and(m, q)
                masks[(dy, dx)] = m.astype(jnp.float32)    # (M, 1)
            else:
                masks[(dy, dx)] = None                     # center tap

        def conv3x3(src32, w_ref, b_ref):
            # Build the (M, n_kblocks*Cp) bf16 im2col patch.  Each K block packs
            # `tpb` taps' real channels side by side in the lane dimension.
            blocks = []
            for g in range(n_kblocks):
                slab = None
                for j in range(tpb):
                    t = g * tpb + j
                    if t >= 9:
                        break
                    dy, dx = taps[t]
                    d = dy * W + dx
                    patch = (src32 if d == 0
                             else pltpu.roll(src32, (-d) % M, axis=0))
                    m = masks[(dy, dx)]
                    if m is not None:
                        patch = patch * m                  # (M,1) lane broadcast
                    if j > 0:
                        # place this tap's channels at lanes [j*C, (j+1)*C)
                        patch = pltpu.roll(patch, j * C, axis=1)
                    slab = patch if slab is None else slab + patch
                blocks.append(slab.astype(jnp.bfloat16))   # one cast per K block
            km = blocks[0] if len(blocks) == 1 else jnp.concatenate(blocks, axis=-1)
            # Single MXU matmul per conv: all taps accumulate inside the MXU.
            acc = jnp.dot(km, w_ref[...], preferred_element_type=jnp.float32)
            return acc + b_ref[...]

        h = jnp.maximum(conv3x3(x32, w1_ref, b1_ref), 0.0)       # conv1+BN1+ReLU
        y = jnp.maximum(conv3x3(h, w2_ref, b2_ref) + x32, 0.0)   # conv2+BN2+res+ReLU
        out_ref[...] = y

    return kernel


def residual_block_pallas(x_nchw, params, eps=1e-5, target_rows=2048,
                          vmem_budget_bytes=28 * 2**20):
    """x_nchw: (B, C, H, W) float32.  Returns (B, C, H, W) float32."""
    B, C, H, W = x_nchw.shape
    HW = H * W
    Cp = _round_up(C, 128)                       # lane-dense channel count
    tpb = max(1, Cp // C)                        # taps packed per K block
    n_kblocks = -(-9 // tpb)
    Kp = n_kblocks * Cp

    # ---- block sizing -------------------------------------------------------
    f = 8 // math.gcd(HW, 8)                     # keep block rows % 8 == 0
    Bf = _round_up(B, f)
    bb = max(1, target_rows // HW)               # boards per grid step
    bb = max(f, (bb // f) * f)
    bb = min(bb, Bf)

    def vmem_est(rows):
        io = 16 * rows * Cp                      # double-buffered f32 in+out blocks
        wts = 8 * Kp * Cp                        # 2 bf16 weight sets, double-buffered
        tmp = rows * (20 * Cp + 2 * Kp)          # f32 temporaries + bf16 im2col patch
        return io + wts + tmp

    while bb > f and vmem_est(bb * HW) > vmem_budget_bytes:
        bb = max(f, ((bb // 2) // f) * f)
    # prefer >= 2 grid steps so megacore (v7x) can shard the batch axis
    if Bf > f and -(-Bf // bb) < 2:
        bb = max(f, ((Bf // f) // 2) * f)
    Bp = _round_up(B, bb)
    Mb = bb * HW
    grid = ((Bp * HW) // Mb,)

    # ---- operand prep (layout + BN folding), done once outside the kernel ---
    x = jnp.transpose(x_nchw, (0, 2, 3, 1)).astype(jnp.float32)   # NCHW -> NHWC
    x = jnp.pad(x, ((0, Bp - B), (0, 0), (0, 0), (0, Cp - C)))
    x = x.reshape(Bp * HW, Cp)                                    # flat, lane-dense

    def fold_bn(mean, var, beta):
        scale = 1.0 / jnp.sqrt(var + eps)        # BN weight frozen to 1
        shift = beta - mean * scale
        shift = jnp.pad(shift, (0, Cp - C)).reshape(1, Cp).astype(jnp.float32)
        return scale, shift

    def prep_conv(w_oihw, scale):
        # (Cout, Cin, 3, 3) -> tap-major (9, Cin, Cout); fold BN scale into Cout;
        # pack `tpb` taps per Cp-row K block -> (Kp, Cp) bf16.
        w = jnp.transpose(w_oihw, (2, 3, 1, 0)).reshape(9, C, C)
        w = w * scale[None, None, :]
        slots = n_kblocks * tpb
        w = jnp.pad(w, ((0, slots - 9), (0, 0), (0, 0)))
        w = w.reshape(n_kblocks, tpb * C, C)
        w = jnp.pad(w, ((0, 0), (0, Cp - tpb * C), (0, Cp - C)))
        return w.reshape(Kp, Cp).astype(jnp.bfloat16)

    s1, b1 = fold_bn(params["bn1_mean"], params["bn1_var"], params["bn1_beta"])
    s2, b2 = fold_bn(params["bn2_mean"], params["bn2_var"], params["bn2_beta"])
    w1 = prep_conv(params["conv1_w"], s1)
    w2 = prep_conv(params["conv2_w"], s2)

    kernel = _make_kernel(H, W, C, tpb, n_kblocks)

    compiler_kwargs = dict(dimension_semantics=("parallel",))
    est = vmem_est(Mb)
    if est > 12 * 2**20:
        # raise the scoped-VMEM limit to match the chosen block size
        compiler_kwargs["vmem_limit_bytes"] = int(min(48 * 2**20, est + 16 * 2**20))

    out = pl.pallas_call(
        kernel,
        out_shape=jax.ShapeDtypeStruct((Bp * HW, Cp), jnp.float32),
        grid_spec=pltpu.PrefetchScalarGridSpec(
            num_scalar_prefetch=0,
            grid=grid,
            in_specs=[
                pl.BlockSpec((Mb, Cp), lambda i: (i, 0)),   # x block
                pl.BlockSpec((Kp, Cp), lambda i: (0, 0)),   # w1 (grid-invariant)
                pl.BlockSpec((1, Cp), lambda i: (0, 0)),    # b1
                pl.BlockSpec((Kp, Cp), lambda i: (0, 0)),   # w2
                pl.BlockSpec((1, Cp), lambda i: (0, 0)),    # b2
            ],
            out_specs=pl.BlockSpec((Mb, Cp), lambda i: (i, 0)),
        ),
        compiler_params=pltpu.CompilerParams(**compiler_kwargs),
    )(x, w1, b1, w2, b2)

    # Strip batch/channel padding; flat NHWC -> NCHW.
    out = out.reshape(Bp, H, W, Cp)[:B, :, :, :C]
    return jnp.transpose(out, (0, 3, 1, 2))


def residual_block_reference(x_nchw, params, eps=1e-5):
    """Pure-JAX f32 reference matching PyTorch eval-mode forward (NCHW)."""
    def conv(x, w):
        return jax.lax.conv_general_dilated(
            x, w, window_strides=(1, 1), padding=((1, 1), (1, 1)),
            dimension_numbers=("NCHW", "OIHW", "NCHW"))

    def bn(x, mean, var, beta):
        return ((x - mean[None, :, None, None])
                / jnp.sqrt(var[None, :, None, None] + eps)
                + beta[None, :, None, None])

    out = bn(conv(x_nchw, params["conv1_w"]),
             params["bn1_mean"], params["bn1_var"], params["bn1_beta"])
    out = jnp.maximum(out, 0.0)
    out = bn(conv(out, params["conv2_w"]),
             params["bn2_mean"], params["bn2_var"], params["bn2_beta"])
    out = out + x_nchw
    return jnp.maximum(out, 0.0)


def make_params(key, channels):
    ks = jax.random.split(key, 8)
    C = channels
    std = 1.0 / np.sqrt(C * 3 * 3)
    return {
        "conv1_w": jax.random.normal(ks[0], (C, C, 3, 3), jnp.float32) * std,
        "conv2_w": jax.random.normal(ks[1], (C, C, 3, 3), jnp.float32) * std,
        "bn1_mean": jax.random.normal(ks[2], (C,), jnp.float32) * 0.1,
        "bn1_var": jax.random.uniform(ks[3], (C,), jnp.float32, 0.5, 1.5),
        "bn1_beta": jax.random.normal(ks[4], (C,), jnp.float32) * 0.1,
        "bn2_mean": jax.random.normal(ks[5], (C,), jnp.float32) * 0.1,
        "bn2_var": jax.random.uniform(ks[6], (C,), jnp.float32, 0.5, 1.5),
        "bn2_beta": jax.random.normal(ks[7], (C,), jnp.float32) * 0.1,
    }


if __name__ == "__main__":
    key = jax.random.PRNGKey(0)
    k_x, k_p = jax.random.split(key)

    B, C, H, W = 2, 32, 8, 8   # LeelaZero board is 8x8; small channel count
    x = jax.random.normal(k_x, (B, C, H, W), jnp.float32)
    params = make_params(k_p, C)

    out = jax.block_until_ready(jax.jit(residual_block_pallas)(x, params))
    ref = jax.block_until_ready(jax.jit(residual_block_reference)(x, params))

    # bf16 MXU operands (f32 accumulation) -> loosened tolerance vs f32 reference.
    np.testing.assert_allclose(np.asarray(out), np.asarray(ref),
                               rtol=5e-2, atol=5e-2)
    print("KERNEL_OK")
</pallas_src>

<mosaic_0001>
module attributes {stable_mosaic.version = 11 : i64} {
  func.func @kernel(%arg0: i32, %arg1: memref<64x128xf32, #tpu.memory_space<vmem>>, %arg2: memref<384x128xbf16, #tpu.memory_space<vmem>>, %arg3: memref<1x128xf32, #tpu.memory_space<vmem>>, %arg4: memref<384x128xbf16, #tpu.memory_space<vmem>>, %arg5: memref<1x128xf32, #tpu.memory_space<vmem>>, %arg6: memref<64x128xf32, #tpu.memory_space<vmem>>) attributes {dimension_semantics = [#tpu.dimension_semantics<parallel>], iteration_bounds = array<i64: 2>, scalar_prefetch = 0 : i64, scratch_operands = 0 : i64, tpu.core_type = #tpu.core_type<tc>, window_params = [{transform_indices = @transform_0, window_bounds = array<i64: 64, 128>}, {pipeline_mode = #tpu.pipeline_mode<synchronous>, transform_indices = @transform_1, window_bounds = array<i64: 384, 128>}, {pipeline_mode = #tpu.pipeline_mode<synchronous>, transform_indices = @transform_2, window_bounds = array<i64: 1, 128>}, {pipeline_mode = #tpu.pipeline_mode<synchronous>, transform_indices = @transform_3, window_bounds = array<i64: 384, 128>}, {pipeline_mode = #tpu.pipeline_mode<synchronous>, transform_indices = @transform_4, window_bounds = array<i64: 1, 128>}, {transform_indices = @transform_5, window_bounds = array<i64: 64, 128>}]} {
    %c0 = arith.constant 0 : index
    %c0_0 = arith.constant 0 : index
    %0 = vector.load %arg1[%c0, %c0_0] : memref<64x128xf32, #tpu.memory_space<vmem>>, vector<64x128xf32>
    %1 = tpu.iota {dimensions = array<i32: 0>} : vector<64x1xi32>
    %c7_i32 = arith.constant 7 : i32
    %2 = vector.broadcast %c7_i32 : i32 to vector<64x1xi32>
    %3 = arith.andi %1, %2 : vector<64x1xi32>
    %c3_i32 = arith.constant 3 : i32
    %4 = vector.broadcast %c3_i32 : i32 to vector<64x1xi32>
    %5 = arith.shrsi %1, %4 : vector<64x1xi32>
    %c7_i32_1 = arith.constant 7 : i32
    %6 = vector.broadcast %c7_i32_1 : i32 to vector<64x1xi32>
    %7 = arith.andi %5, %6 : vector<64x1xi32>
    %c1_i32 = arith.constant 1 : i32
    %8 = vector.broadcast %c1_i32 : i32 to vector<64x1xi32>
    %9 = arith.cmpi sge, %7, %8 : vector<64x1xi32>
    %c1_i32_2 = arith.constant 1 : i32
    %10 = vector.broadcast %c1_i32_2 : i32 to vector<64x1xi32>
    %11 = arith.cmpi sge, %3, %10 : vector<64x1xi32>
    %12 = arith.andi %9, %11 : vector<64x1xi1>
    %13 = arith.extui %12 : vector<64x1xi1> to vector<64x1xi32>
    %14 = arith.sitofp %13 : vector<64x1xi32> to vector<64x1xf32>
    %c1_i32_3 = arith.constant 1 : i32
    %15 = vector.broadcast %c1_i32_3 : i32 to vector<64x1xi32>
    %16 = arith.cmpi sge, %7, %15 : vector<64x1xi32>
    %17 = arith.extui %16 : vector<64x1xi1> to vector<64x1xi32>
    %18 = arith.sitofp %17 : vector<64x1xi32> to vector<64x1xf32>
    %c1_i32_4 = arith.constant 1 : i32
    %19 = vector.broadcast %c1_i32_4 : i32 to vector<64x1xi32>
    %20 = arith.cmpi sge, %7, %19 : vector<64x1xi32>
    %c6_i32 = arith.constant 6 : i32
    %21 = vector.broadcast %c6_i32 : i32 to vector<64x1xi32>
    %22 = arith.cmpi sle, %3, %21 : vector<64x1xi32>
    %23 = arith.andi %20, %22 : vector<64x1xi1>
    %24 = arith.extui %23 : vector<64x1xi1> to vector<64x1xi32>
    %25 = arith.sitofp %24 : vector<64x1xi32> to vector<64x1xf32>
    %c1_i32_5 = arith.constant 1 : i32
    %26 = vector.broadcast %c1_i32_5 : i32 to vector<64x1xi32>
    %27 = arith.cmpi sge, %3, %26 : vector<64x1xi32>
    %28 = arith.extui %27 : vector<64x1xi1> to vector<64x1xi32>
    %29 = arith.sitofp %28 : vector<64x1xi32> to vector<64x1xf32>
    %c6_i32_6 = arith.constant 6 : i32
    %30 = vector.broadcast %c6_i32_6 : i32 to vector<64x1xi32>
    %31 = arith.cmpi sle, %3, %30 : vector<64x1xi32>
    %32 = arith.extui %31 : vector<64x1xi1> to vector<64x1xi32>
    %33 = arith.sitofp %32 : vector<64x1xi32> to vector<64x1xf32>
    %c6_i32_7 = arith.constant 6 : i32
    %34 = vector.broadcast %c6_i32_7 : i32 to vector<64x1xi32>
    %35 = arith.cmpi sle, %7, %34 : vector<64x1xi32>
    %c1_i32_8 = arith.constant 1 : i32
    %36 = vector.broadcast %c1_i32_8 : i32 to vector<64x1xi32>
    %37 = arith.cmpi sge, %3, %36 : vector<64x1xi32>
    %38 = arith.andi %35, %37 : vector<64x1xi1>
    %39 = arith.extui %38 : vector<64x1xi1> to vector<64x1xi32>
    %40 = arith.sitofp %39 : vector<64x1xi32> to vector<64x1xf32>
    %c6_i32_9 = arith.constant 6 : i32
    %41 = vector.broadcast %c6_i32_9 : i32 to vector<64x1xi32>
    %42 = arith.cmpi sle, %7, %41 : vector<64x1xi32>
    %43 = arith.extui %42 : vector<64x1xi1> to vector<64x1xi32>
    %44 = arith.sitofp %43 : vector<64x1xi32> to vector<64x1xf32>
    %c6_i32_10 = arith.constant 6 : i32
    %45 = vector.broadcast %c6_i32_10 : i32 to vector<64x1xi32>
    %46 = arith.cmpi sle, %7, %45 : vector<64x1xi32>
    %c6_i32_11 = arith.constant 6 : i32
    %47 = vector.broadcast %c6_i32_11 : i32 to vector<64x1xi32>
    %48 = arith.cmpi sle, %3, %47 : vector<64x1xi32>
    %49 = arith.andi %46, %48 : vector<64x1xi1>
    %50 = arith.extui %49 : vector<64x1xi1> to vector<64x1xi32>
    %51 = arith.sitofp %50 : vector<64x1xi32> to vector<64x1xf32>
    %c9_i32 = arith.constant 9 : i32
    %52 = tpu.dynamic_rotate %0 by %c9_i32 dim 0 : vector<64x128xf32>, i32 -> vector<64x128xf32>
    %53 = vector.broadcast %14 : vector<64x1xf32> to vector<64x128xf32>
    %54 = arith.mulf %52, %53 : vector<64x128xf32>
    %c8_i32 = arith.constant 8 : i32
    %55 = tpu.dynamic_rotate %0 by %c8_i32 dim 0 : vector<64x128xf32>, i32 -> vector<64x128xf32>
    %56 = vector.broadcast %18 : vector<64x1xf32> to vector<64x128xf32>
    %57 = arith.mulf %55, %56 : vector<64x128xf32>
    %c32_i32 = arith.constant 32 : i32
    %58 = tpu.dynamic_rotate %57 by %c32_i32 dim 1 : vector<64x128xf32>, i32 -> vector<64x128xf32>
    %59 = arith.addf %54, %58 : vector<64x128xf32>
    %c7_i32_12 = arith.constant 7 : i32
    %60 = tpu.dynamic_rotate %0 by %c7_i32_12 dim 0 : vector<64x128xf32>, i32 -> vector<64x128xf32>
    %61 = vector.broadcast %25 : vector<64x1xf32> to vector<64x128xf32>
    %62 = arith.mulf %60, %61 : vector<64x128xf32>
    %c64_i32 = arith.constant 64 : i32
    %63 = tpu.dynamic_rotate %62 by %c64_i32 dim 1 : vector<64x128xf32>, i32 -> vector<64x128xf32>
    %64 = arith.addf %59, %63 : vector<64x128xf32>
    %c1_i32_13 = arith.constant 1 : i32
    %65 = tpu.dynamic_rotate %0 by %c1_i32_13 dim 0 : vector<64x128xf32>, i32 -> vector<64x128xf32>
    %66 = vector.broadcast %29 : vector<64x1xf32> to vector<64x128xf32>
    %67 = arith.mulf %65, %66 : vector<64x128xf32>
    %c96_i32 = arith.constant 96 : i32
    %68 = tpu.dynamic_rotate %67 by %c96_i32 dim 1 : vector<64x128xf32>, i32 -> vector<64x128xf32>
    %69 = arith.addf %64, %68 : vector<64x128xf32>
    %70 = arith.truncf %69 : vector<64x128xf32> to vector<64x128xbf16>
    %c63_i32 = arith.constant 63 : i32
    %71 = tpu.dynamic_rotate %0 by %c63_i32 dim 0 : vector<64x128xf32>, i32 -> vector<64x128xf32>
    %72 = vector.broadcast %33 : vector<64x1xf32> to vector<64x128xf32>
    %73 = arith.mulf %71, %72 : vector<64x128xf32>
    %c32_i32_14 = arith.constant 32 : i32
    %74 = tpu.dynamic_rotate %73 by %c32_i32_14 dim 1 : vector<64x128xf32>, i32 -> vector<64x128xf32>
    %75 = arith.addf %0, %74 : vector<64x128xf32>
    %c57_i32 = arith.constant 57 : i32
    %76 = tpu.dynamic_rotate %0 by %c57_i32 dim 0 : vector<64x128xf32>, i32 -> vector<64x128xf32>
    %77 = vector.broadcast %40 : vector<64x1xf32> to vector<64x128xf32>
    %78 = arith.mulf %76, %77 : vector<64x128xf32>
    %c64_i32_15 = arith.constant 64 : i32
    %79 = tpu.dynamic_rotate %78 by %c64_i32_15 dim 1 : vector<64x128xf32>, i32 -> vector<64x128xf32>
    %80 = arith.addf %75, %79 : vector<64x128xf32>
    %c56_i32 = arith.constant 56 : i32
    %81 = tpu.dynamic_rotate %0 by %c56_i32 dim 0 : vector<64x128xf32>, i32 -> vector<64x128xf32>
    %82 = vector.broadcast %44 : vector<64x1xf32> to vector<64x128xf32>
    %83 = arith.mulf %81, %82 : vector<64x128xf32>
    %c96_i32_16 = arith.constant 96 : i32
    %84 = tpu.dynamic_rotate %83 by %c96_i32_16 dim 1 : vector<64x128xf32>, i32 -> vector<64x128xf32>
    %85 = arith.addf %80, %84 : vector<64x128xf32>
    %86 = arith.truncf %85 : vector<64x128xf32> to vector<64x128xbf16>
    %c55_i32 = arith.constant 55 : i32
    %87 = tpu.dynamic_rotate %0 by %c55_i32 dim 0 : vector<64x128xf32>, i32 -> vector<64x128xf32>
    %88 = vector.broadcast %51 : vector<64x1xf32> to vector<64x128xf32>
    %89 = arith.mulf %87, %88 : vector<64x128xf32>
    %90 = arith.truncf %89 : vector<64x128xf32> to vector<64x128xbf16>
    %91 = tpu.concatenate %70, %86, %90 in 1 : vector<64x128xbf16>, vector<64x128xbf16>, vector<64x128xbf16> -> vector<64x384xbf16>
    %c0_17 = arith.constant 0 : index
    %c0_18 = arith.constant 0 : index
    %92 = vector.load %arg2[%c0_17, %c0_18] : memref<384x128xbf16, #tpu.memory_space<vmem>>, vector<384x128xbf16>
    %cst = arith.constant dense<0.000000e+00> : vector<64x128xf32>
    %93 = tpu.matmul %91, %92, %cst {dimension_numbers = #tpu.dot_dimension_numbers<[1], [0], [0], [1], [0, 0, 1, 1], [], []>} : vector<64x384xbf16>, vector<384x128xbf16>, vector<64x128xf32> -> vector<64x128xf32>
    %c0_19 = arith.constant 0 : index
    %c0_20 = arith.constant 0 : index
    %94 = vector.load %arg3[%c0_19, %c0_20] : memref<1x128xf32, #tpu.memory_space<vmem>>, vector<1x128xf32>
    %95 = vector.broadcast %94 : vector<1x128xf32> to vector<64x128xf32>
    %96 = arith.addf %93, %95 : vector<64x128xf32>
    %cst_21 = arith.constant 0.000000e+00 : f32
    %97 = vector.broadcast %cst_21 : f32 to vector<64x128xf32>
    %98 = arith.maximumf %96, %97 : vector<64x128xf32>
    %c9_i32_22 = arith.constant 9 : i32
    %99 = tpu.dynamic_rotate %98 by %c9_i32_22 dim 0 : vector<64x128xf32>, i32 -> vector<64x128xf32>
    %100 = vector.broadcast %14 : vector<64x1xf32> to vector<64x128xf32>
    %101 = arith.mulf %99, %100 : vector<64x128xf32>
    %c8_i32_23 = arith.constant 8 : i32
    %102 = tpu.dynamic_rotate %98 by %c8_i32_23 dim 0 : vector<64x128xf32>, i32 -> vector<64x128xf32>
    %103 = vector.broadcast %18 : vector<64x1xf32> to vector<64x128xf32>
    %104 = arith.mulf %102, %103 : vector<64x128xf32>
    %c32_i32_24 = arith.constant 32 : i32
    %105 = tpu.dynamic_rotate %104 by %c32_i32_24 dim 1 : vector<64x128xf32>, i32 -> vector<64x128xf32>
    %106 = arith.addf %101, %105 : vector<64x128xf32>
    %c7_i32_25 = arith.constant 7 : i32
    %107 = tpu.dynamic_rotate %98 by %c7_i32_25 dim 0 : vector<64x128xf32>, i32 -> vector<64x128xf32>
    %108 = vector.broadcast %25 : vector<64x1xf32> to vector<64x128xf32>
    %109 = arith.mulf %107, %108 : vector<64x128xf32>
    %c64_i32_26 = arith.constant 64 : i32
    %110 = tpu.dynamic_rotate %109 by %c64_i32_26 dim 1 : vector<64x128xf32>, i32 -> vector<64x128xf32>
    %111 = arith.addf %106, %110 : vector<64x128xf32>
    %c1_i32_27 = arith.constant 1 : i32
    %112 = tpu.dynamic_rotate %98 by %c1_i32_27 dim 0 : vector<64x128xf32>, i32 -> vector<64x128xf32>
    %113 = vector.broadcast %29 : vector<64x1xf32> to vector<64x128xf32>
    %114 = arith.mulf %112, %113 : vector<64x128xf32>
    %c96_i32_28 = arith.constant 96 : i32
    %115 = tpu.dynamic_rotate %114 by %c96_i32_28 dim 1 : vector<64x128xf32>, i32 -> vector<64x128xf32>
    %116 = arith.addf %111, %115 : vector<64x128xf32>
    %117 = arith.truncf %116 : vector<64x128xf32> to vector<64x128xbf16>
    %c63_i32_29 = arith.constant 63 : i32
    %118 = tpu.dynamic_rotate %98 by %c63_i32_29 dim 0 : vector<64x128xf32>, i32 -> vector<64x128xf32>
    %119 = vector.broadcast %33 : vector<64x1xf32> to vector<64x128xf32>
    %120 = arith.mulf %118, %119 : vector<64x128xf32>
    %c32_i32_30 = arith.constant 32 : i32
    %121 = tpu.dynamic_rotate %120 by %c32_i32_30 dim 1 : vector<64x128xf32>, i32 -> vector<64x128xf32>
    %122 = arith.addf %98, %121 : vector<64x128xf32>
    %c57_i32_31 = arith.constant 57 : i32
    %123 = tpu.dynamic_rotate %98 by %c57_i32_31 dim 0 : vector<64x128xf32>, i32 -> vector<64x128xf32>
    %124 = vector.broadcast %40 : vector<64x1xf32> to vector<64x128xf32>
    %125 = arith.mulf %123, %124 : vector<64x128xf32>
    %c64_i32_32 = arith.constant 64 : i32
    %126 = tpu.dynamic_rotate %125 by %c64_i32_32 dim 1 : vector<64x128xf32>, i32 -> vector<64x128xf32>
    %127 = arith.addf %122, %126 : vector<64x128xf32>
    %c56_i32_33 = arith.constant 56 : i32
    %128 = tpu.dynamic_rotate %98 by %c56_i32_33 dim 0 : vector<64x128xf32>, i32 -> vector<64x128xf32>
    %129 = vector.broadcast %44 : vector<64x1xf32> to vector<64x128xf32>
    %130 = arith.mulf %128, %129 : vector<64x128xf32>
    %c96_i32_34 = arith.constant 96 : i32
    %131 = tpu.dynamic_rotate %130 by %c96_i32_34 dim 1 : vector<64x128xf32>, i32 -> vector<64x128xf32>
    %132 = arith.addf %127, %131 : vector<64x128xf32>
    %133 = arith.truncf %132 : vector<64x128xf32> to vector<64x128xbf16>
    %c55_i32_35 = arith.constant 55 : i32
    %134 = tpu.dynamic_rotate %98 by %c55_i32_35 dim 0 : vector<64x128xf32>, i32 -> vector<64x128xf32>
    %135 = vector.broadcast %51 : vector<64x1xf32> to vector<64x128xf32>
    %136 = arith.mulf %134, %135 : vector<64x128xf32>
    %137 = arith.truncf %136 : vector<64x128xf32> to vector<64x128xbf16>
    %138 = tpu.concatenate %117, %133, %137 in 1 : vector<64x128xbf16>, vector<64x128xbf16>, vector<64x128xbf16> -> vector<64x384xbf16>
    %c0_36 = arith.constant 0 : index
    %c0_37 = arith.constant 0 : index
    %139 = vector.load %arg4[%c0_36, %c0_37] : memref<384x128xbf16, #tpu.memory_space<vmem>>, vector<384x128xbf16>
    %cst_38 = arith.constant dense<0.000000e+00> : vector<64x128xf32>
    %140 = tpu.matmul %138, %139, %cst_38 {dimension_numbers = #tpu.dot_dimension_numbers<[1], [0], [0], [1], [0, 0, 1, 1], [], []>} : vector<64x384xbf16>, vector<384x128xbf16>, vector<64x128xf32> -> vector<64x128xf32>
    %c0_39 = arith.constant 0 : index
    %c0_40 = arith.constant 0 : index
    %141 = vector.load %arg5[%c0_39, %c0_40] : memref<1x128xf32, #tpu.memory_space<vmem>>, vector<1x128xf32>
    %142 = vector.broadcast %141 : vector<1x128xf32> to vector<64x128xf32>
    %143 = arith.addf %140, %142 : vector<64x128xf32>
    %144 = arith.addf %143, %0 : vector<64x128xf32>
    %cst_41 = arith.constant 0.000000e+00 : f32
    %145 = vector.broadcast %cst_41 : f32 to vector<64x128xf32>
    %146 = arith.maximumf %144, %145 : vector<64x128xf32>
    %c0_42 = arith.constant 0 : index
    %c0_43 = arith.constant 0 : index
    %147 = vector.load %arg6[%c0_42, %c0_43] : memref<64x128xf32, #tpu.memory_space<vmem>>, vector<64x128xf32>
    tpu.vector_store %arg6[%c0_42, %c0_43], %146 {strides = array<i32>} : memref<64x128xf32, #tpu.memory_space<vmem>>, vector<64x128xf32>,
    return
  }
  func.func @transform_0(%arg0: i32) -> (i32, i32) {
    %c0_i32 = arith.constant 0 : i32
    %c0_i32_0 = arith.constant 0 : i32
    return %arg0, %c0_i32 : i32, i32
  }
  func.func @transform_1(%arg0: i32) -> (i32, i32) {
    %c0_i32 = arith.constant 0 : i32
    %c0_i32_0 = arith.constant 0 : i32
    %c0_i32_1 = arith.constant 0 : i32
    return %c0_i32, %c0_i32_0 : i32, i32
  }
  func.func @transform_2(%arg0: i32) -> (i32, i32) {
    %c0_i32 = arith.constant 0 : i32
    %c0_i32_0 = arith.constant 0 : i32
    %c0_i32_1 = arith.constant 0 : i32
    return %c0_i32, %c0_i32_0 : i32, i32
  }
  func.func @transform_3(%arg0: i32) -> (i32, i32) {
    %c0_i32 = arith.constant 0 : i32
    %c0_i32_0 = arith.constant 0 : i32
    %c0_i32_1 = arith.constant 0 : i32
    return %c0_i32, %c0_i32_0 : i32, i32
  }
  func.func @transform_4(%arg0: i32) -> (i32, i32) {
    %c0_i32 = arith.constant 0 : i32
    %c0_i32_0 = arith.constant 0 : i32
    %c0_i32_1 = arith.constant 0 : i32
    return %c0_i32, %c0_i32_0 : i32, i32
  }
  func.func @transform_5(%arg0: i32) -> (i32, i32) {
    %c0_i32 = arith.constant 0 : i32
    %c0_i32_0 = arith.constant 0 : i32
    return %arg0, %c0_i32 : i32, i32
  }
}

</mosaic_0001>

<bundles_post_ra>
// kernel: residual_block_pallas.1
= control target key start
LH: loop header
LB: loop body
LE: loop exit
PB: predicated region body
PF: predicated region fallthrough
CT: control target
= control target key end

     0   :  { %s2101_s18 = smov 0   ;;  %s3496_s0 = inlined_call_operand.vmem [shape: f32[128,128], index: 0, kind: input, shape index: {}]   ;;  %s3497_s1 = inlined_call_operand.vmem [shape: bf16[384,128], index: 1, kind: input, shape index: {}]   ;;  %s3498_s2 = inlined_call_operand.vmem [shape: f32[1,128], index: 2, kind: input, shape index: {}]   ;;  %s3499_s3 = inlined_call_operand.vmem [shape: bf16[384,128], index: 3, kind: input, shape index: {}]   ;;  %s3500_s4 = inlined_call_operand.vmem [shape: f32[1,128], index: 4, kind: input, shape index: {}]   ;;  %s3501_s5 = inlined_call_operand.vmem [shape: f32[128,128], index: 5, kind: output, shape index: {}]  }
   0x1 LB: > { %s1714_s19 = sadd.s32 4294967295, %s2065_s18   ;;  %p1718_p0 = scmp.ge.s32.totalorder %s2065_s18, 1  ;;  %s2065_s18 = sphi %s2101_s18, %s15_s18  }
   0x2   : > { %p188_p1 = scmp.lt.s32.totalorder %s2065_s18, 3 }
   0x4   : > { %p189_p2 = pnand %p1718_p0, %p188_p1 }
   0x6   : > { %192 = sbr.rel (%p189_p2) target bundleno = 839 (0x347), region = 40 }
   0xd   : > { %s1719_s20 = sshll.u32 %s1714_s19, 3  ;;  %v237_v0 = vlaneseq  ;;  %v2003_v1 = vld [vmem:[%s3497_s1 + $0x40] sm:$0xff]   ;;  %v2005_v4 = vld [vmem:[%s3497_s1 + $0x48] sm:$0xff]   ;;  %v3515_v17 = vmov 0.0   ;;  %s2068_s10 = smov 32   ;;  %v2008_v39 = vld [vmem:[%s3497_s1 + $0x50] sm:$0xff]  }
   0xe   : > { %p217_p3 = scmp.lt.s32.totalorder %s1719_s20, 15  ;;  %1839 = vmatprep.subr.bf16.mxu0 %v2003_v1  ;;  %v2004_v3 = vld [vmem:[%s3497_s1] sm:$0xff]   ;;  %v2007_v9 = vld [vmem:[%s3497_s1 + $0x8] sm:$0xff]   ;;  %v2010_v51 = vld [vmem:[%s3497_s1 + $0x10] sm:$0xff]   ;;  %s2069_s25 = smov 64  }
   0xf   : > { %v2112_v2 = vshrl.u32 %v237_v0, 7  ;;  %v2006_v5 = vld [vmem:[%s3497_s1 + $0x80] sm:$0xff]   ;;  %1840 = vmatpush3.bf16.msra.mxu0 %v2004_v3  ;;  %v2009_v46 = vld [vmem:[%s3497_s1 + $0x88] sm:$0xff]   ;;  %v2011_v54 = vld [vmem:[%s3497_s1 + $0x58] sm:$0xff]   ;;  %s2070_s14 = smov 96  }
  0x10   : > { %s3760_s20 = smov (!%p217_p3, %s1719_s20), 15  ;;  %1841 = vmatprep.subr.bf16.mxu0 %v2005_v4  ;;  %1943 = vmatprep.subr.bf16.mxu1 %v2006_v5  ;;  %v2012_v55 = vld [vmem:[%s3497_s1 + $0x90] sm:$0xff]   ;;  %v2013_v58 = vld [vmem:[%s3497_s1 + $0x18] sm:$0xff]   ;;  %v2014_v4 = vld [vmem:[%s3497_s1 + $0x60] sm:$0xff]  }
  0x11   : > { %v254_v6 = vshra.s32 %v2112_v2, 3  ;;  %v246_v7 = vand.u32 7, %v2112_v2  ;;  %v239_v8 = vadd.s32 8, %v2112_v2  ;;  %s1720_s29 = sshll.u32 %s3760_s20, 3  ;;  %vm3503_vm0 = vcmp.lt.s32.totalorder %v2112_v2, 7  ;;  %1944 = vmatpush3.bf16.msra.mxu1 %v2006_v5  ;;  %v2015_v5 = vld [vmem:[%s3497_s1 + $0x98] sm:$0xff]  }
  0x12   : > { %s2138_s9 = scalar_lea.vmem %s3496_s0, %s1720_s29  ;;  %vm3513_vm2 = vcmp.lt.s32.totalorder %v2112_v2, 1  ;;  %v241_v49 = vadd.s32 24, %v2112_v2  ;;  %1945 = vmatprep.subr.bf16.mxu1 %v2009_v46  ;;  %v240_v61 = vadd.s32 16, %v2112_v2  ;;  %s3468_s7 = scalar_lea.vmem %s3501_s5, %s1720_s29 }
  0x13   : > { %v2140_v10 = vand.u32 7, %v254_v6  ;;  %vm2142_vm1 = vcmp.le.s32.totalorder %v246_v7, 6  ;;  %v255_v12 = vshra.s32 %v239_v8, 3  ;;  %v247_v13 = vand.u32 7, %v239_v8  ;;  %v2147_v14 = vld [vmem:[%s2138_s9 + $0x38] sm:$0xff]  ;;  %v2150_v15 = vld [vmem:[%s2138_s9] sm:$0xff]  ;;  %1842 = vmatpush3.bf16.msra.mxu0 %v2007_v9 }
  0x14   : > { %v2153_v16 = vld [vmem:[%s2138_s9 + $0x8] sm:$0xff]  ;;  %v2158_v18 = vsel %vm2142_vm1, 1.0, %v3515_v17  ;;  %vm2161_vm3 = vcmp.ge.s32.totalorder %v246_v7, 1  ;;  %v519_v20 = vrot.slane %v2150_v15, 1  ;;  %v2171_v23 = vld [vmem:[%s2138_s9 + $0x10] sm:$0xff]  ;;  %v462_v42 = vrot.slane %v2150_v15, 7  ;;  %1843 = vmatprep.subr.bf16.mxu0 %v2008_v39 }
  0x15   : > { %vm270_vm4 = vcmp.ge.s32.totalorder %v2140_v10, 1  ;;  %v520_v21 = vrot.slane %v2153_v16, 1  ;;  %v2168_v22 = vand.u32 7, %v255_v12  ;;  %vm2178_vm5 = vcmp.le.s32.totalorder %v247_v13, 6  ;;  %1946 = vmatpush3.bf16.msra.mxu1 %v2009_v46  ;;  %v2318_v59 = vld [vmem:[%s2138_s9 + $0x18] sm:$0xff]  ;;  %v2345_v8 = vld [vmem:[%s2138_s9 + $0x20] sm:$0xff] }
  0x16   : > { %v2176_v24 = vsel %vm270_vm4, 1.0, %v3515_v17  ;;  %v521_v26 = vrot.slane %v2171_v23, 1  ;;  %vm2183_vm6 = vcmp.ge.s32.totalorder %v247_v13, 1  ;;  %v2197_v30 = vsel %vm2178_vm5, 1.0, %v3515_v17  ;;  %vm2203_vm8 = vmand %vm270_vm4, %vm2161_vm3  ;;  %1947 = vmatprep.subr.bf16.mxu1 %v2012_v55  ;;  %v2016_v9 = vld [vmem:[%s3497_s1 + $0x20] sm:$0xff]  }
  0x17   : > { %3565 = vst [vmem:[#allocation2_spill] sm:$0xff] %v2176_v24  ;;  %v487_v28 = vmul.f32 %v2176_v24, %v2147_v14  ;;  %v2191_v29 = vsel %vm3503_vm0, %v519_v20, %v520_v21  ;;  %vm271_vm7 = vcmp.ge.s32.totalorder %v2168_v22, 1  ;;  %3570 = vst [vmem:[#allocation3_spill] sm:$0xff] %v2197_v30  ;;  %vm3502_vm9 = vcmp.le.s32.totalorder %v2168_v22, 6  ;;  %1844 = vmatpush3.bf16.msra.mxu0 %v2010_v51  ;;  %v2019_v51 = vld [vmem:[%s3497_s1 + $0x28] sm:$0xff]  }
  0x18   : > { %v604_v32 = vmul.f32 %v2158_v18, %v2191_v29  ;;  %v2212_v33 = vsel %vm271_vm7, 1.0, %v3515_v17  ;;  %v2218_v34 = vsel %vm3503_vm0, %v520_v21, %v521_v26  ;;  %vm2225_vm10 = vmand %vm271_vm7, %vm2178_vm5  ;;  %v463_v37 = vrot.slane %v2153_v16, 7  ;;  %1845 = vmatprep.subr.bf16.mxu0 %v2011_v54 }
  0x19   : > { %495 = vrot.lane.b32.xlu1 %v487_v28, %s2068_s10  ;;  %v488_v36 = vmul.f32 %v2212_v33, %v2150_v15  ;;  %vm399_vm11 = vmand %vm3502_vm9, %vm2183_vm6  ;;  %v464_v38 = vrot.slane %v2171_v23, 7  ;;  %v605_v40 = vmul.f32 %v2197_v30, %v2218_v34  ;;  %vm3504_vm12 = vcmp.le.s32.totalorder %v2140_v10, 6  ;;  %1948 = vmatpush3.bf16.msra.mxu1 %v2012_v55 }
  0x1a   : > { %612 = vrot.lane.b32.xlu0 %v604_v32, %s2068_s10  ;;  %v2245_v41 = vsel %vm399_vm11, 1.0, %v3515_v17  ;;  %vm2253_vm13 = vmand %vm271_vm7, %vm2183_vm6  ;;  %v3508_v45 = vrot.slane %v2147_v14, 1  ;;  %v2278_v48 = vsel %vm3513_vm2, %v462_v42, %v463_v37  ;;  %v2297_v53 = vsel %vm2225_vm10, 1.0, %v3515_v17  ;;  %1949 = vmatprep.subr.bf16.mxu1 %v2015_v5 }
  0x1b   : > { %3575 = vst [vmem:[#allocation4_spill] sm:$0xff] %v2245_v41  ;;  %v2261_v44 = vsel %vm3513_vm2, %v463_v37, %v464_v38  ;;  %vm398_vm14 = vmand %vm3504_vm12, %vm2161_vm3  ;;  %v249_v60 = vand.u32 7, %v241_v49  ;;  %v537_v62 = vmul.f32 %v2297_v53, %v2191_v29  ;;  %v2327_v63 = vsel %vm3502_vm9, 1.0, %v3515_v17  ;;  %1846 = vmatpush3.bf16.msra.mxu0 %v2013_v58  ;;  %v2020_v58 = vld [vmem:[%s3497_s1 + $0x70] sm:$0xff]  }
  0x1c   : > { %v2272_v47 = vsel %vm398_vm14, 1.0, %v3515_v17  ;;  %vm334_vm15 = vmand %vm270_vm4, %vm2142_vm1  ;;  %v637_v50 = vmul.f32 %v2245_v41, %v2261_v44  ;;  %v2312_v57 = vsel %vm3503_vm0, %v3508_v45, %v519_v20  ;;  %v257_v0 = vshra.s32 %v241_v49, 3  ;;  %1847 = vmatprep.subr.bf16.mxu0 %v2014_v4  ;;  %v2017_v20 = vld [vmem:[%s3497_s1 + $0x68] sm:$0xff]  }
  0x1d   : > { %497 = vrot.lane.b32.xlu1 %v488_v36, %s2068_s10  ;;  %v636_v52 = vmul.f32 %v2272_v47, %v2278_v48  ;;  %v2306_v56 = vsel %vm334_vm15, 1.0, %v3515_v17  ;;  %v256_v3 = vshra.s32 %v240_v61, 3  ;;  %v2341_v6 = vsel %vm3504_vm12, 1.0, %v3515_v17  ;;  %1950 = vmatpush3.bf16.msra.mxu1 %v2015_v5 }
  0x1e   : > { %614 = vrot.lane.b32.xlu0 %v605_v40, %s2068_s10  ;;  %3578 = vst [vmem:[#allocation5_spill] sm:$0xff] %v2306_v56  ;;  %v536_v1 = vmul.f32 %v2306_v56, %v2312_v57  ;;  %v3507_v7 = vrot.slane %v2147_v14, 7  ;;  %v669_v12 = vmul.f32 %v2327_v63, %v2171_v23  ;;  %v248_v13 = vand.u32 7, %v240_v61 }
  0x1f   : > { %v2359_v21 = vsel %vm2183_vm6, 1.0, %v3515_v17  ;;  %vm2361_vm4 = vcmp.le.s32.totalorder %v249_v60, 6  ;;  %v522_v32 = vrot.slane %v2318_v59, 1  ;;  %v2366_v35 = vand.u32 7, %v257_v0  ;;  %1848 = vmatpush3.bf16.msra.mxu0 %v2016_v9 }
  0x20   : > { %v668_v36 = vmul.f32 %v2341_v6, %v2153_v16  ;;  %v3510_v37 = vrot.slane %v2345_v8, 1  ;;  %v2372_v39 = vand.u32 7, %v256_v3  ;;  %v2377_v27 = vsel %vm2161_vm3, 1.0, %v3515_v17  ;;  %1849 = vmatprep.subr.bf16.mxu0 %v2017_v20  ;;  %v2022_v3 = vld [vmem:[%s3497_s1 + $0x30] sm:$0xff]  }
  0x21   : > { %646 = vrot.lane.b32.xlu1 %v637_v50, %s2069_s25  ;;  %3581 = vst [vmem:[#allocation6_spill] sm:$0xff] %v2377_v27  ;;  %v2385_v40 = vsel %vm3513_vm2, %v3507_v7, %v462_v42  ;;  %v2390_v46 = vsel %vm2361_vm4, 1.0, %v3515_v17  ;;  %vm2392_vm6 = vcmp.le.s32.totalorder %v248_v13, 6  ;;  %vm2396_vm3 = vcmp.ge.s32.totalorder %v249_v60, 1  ;;  %v2018_v42 = vld [vmem:[%s3497_s1 + $0xa0] sm:$0xff]  }
  0x22   : > { %644 = vrot.lane.b32.xlu0 %v636_v52, %s2069_s25  ;;  %3582 = vst [vmem:[#allocation7_spill] sm:$0xff] %v2390_v46  ;;  %v569_v50 = vmul.f32 %v2359_v21, %v2278_v48  ;;  %vm3505_vm7 = vcmp.ge.s32.totalorder %v2366_v35, 1  ;;  %v568_v52 = vmul.f32 %v2377_v27, %v2385_v40  ;;  %v2417_v54 = vsel %vm3503_vm0, %v522_v32, %v3510_v37 }
  0x23   : > { %vm272_vm10 = vcmp.ge.s32.totalorder %v2372_v39, 1  ;;  %vm2420_vm11 = vcmp.ge.s32.totalorder %v248_v13, 1  ;;  %1951 = vmatprep.subr.bf16.mxu1 %v2018_v42  ;;  %vm2431_vm14 = vmand %vm3505_vm7, %vm2396_vm3  ;;  %v3589_v60 = vmov 0  ;;  %v2438_v61 = vsel %vm2392_vm6, 1.0, %v3515_v17  ;;  %1850 = vmatpush3.bf16.msra.mxu0 %v2019_v51  ;;  %v2023_v13 = vld [vmem:[%s3497_s1 + $0x78] sm:$0xff]  }
  0x24   : > { %v3590_v60 = vsel %vm2431_vm14, 4294967295, %v3589_v60  ;;  %3591 = vst [vmem:[#allocation8_spill] sm:$0xff] %v2438_v61  ;;  %1952 = vmatpush3.bf16.msra.mxu1 %v2018_v42  ;;  %vm2450_vm15 = vmand %vm272_vm10, %vm2420_vm11  ;;  %v3592_v0 = vmov 0  ;;  %vm3514_vm9 = vcmp.le.s32.totalorder %v2366_v35, 6  ;;  %1851 = vmatprep.subr.bf16.mxu0 %v2020_v58  ;;  %v2471_v5 = vsel %vm3505_vm7, 1.0, %v3515_v17  ;;  %v2025_v42 = vld [vmem:[%s3497_s1 + $0x38] sm:$0xff]  }
  0x25   : > { %546 = vrot.lane.b32.xlu1 %v537_v62, %s2069_s25  ;;  %v2444_v62 = vsel %vm3503_vm0, %v521_v26, %v522_v32  ;;  %v3593_v0 = vsel %vm2450_vm15, 4294967295, %v3592_v0  ;;  %vm3506_vm0 = vcmp.le.s32.totalorder %v2372_v39, 6  ;;  %v2021_v26 = vld [vmem:[%s3497_s1 + $0xa8] sm:$0xff]   ;;  %3594 = vst [vmem:[#allocation9_spill] sm:$0xff] %v2471_v5  ;;  %v465_v9 = vrot.slane %v2318_v59, 7  ;;  %vm401_vm12 = vmand %vm3514_vm9, %vm2396_vm3  ;;  %v2024_v32 = vld [vmem:[%s3497_s1 + $0xb0] sm:$0xff]  }
  0x26   : > { %544 = vrot.lane.b32.xlu0 %v536_v1, %s2069_s25  ;;  %v607_v1 = vmul.f32 %v2390_v46, %v2417_v54  ;;  %v606_v4 = vmul.f32 %v2438_v61, %v2444_v62  ;;  %v2481_v20 = vsel %vm272_vm10, 1.0, %v3515_v17  ;;  %1953 = vmatprep.subr.bf16.mxu1 %v2021_v26  ;;  %vm400_vm7 = vmand %vm3506_vm0, %vm2420_vm11  ;;  %v2504_v51 = vsel %vm401_vm12, 1.0, %v3515_v17 }
  0x27   : > { %1852 = vmatpush3.bf16.msra.mxu0 %v2022_v3  ;;  %3595 = vst [vmem:[#allocation10_spill] sm:$0xff] %v2504_v51  ;;  %v2513_v58 = vsel %vm400_vm7, 1.0, %v3515_v17  ;;  %vm3597_vm12 = vcmp.ge.s32.totalorder %v2366_v35, 1  ;;  %v2026_v3 = vld [vmem:[%s3497_s1 + $0xb8] sm:$0xff]   ;;  %vm336_vm7 = vmand %vm272_vm10, %vm2392_vm6  ;;  %vm3617_vm14 = vcmp.le.s32.totalorder %v2372_v39, 6  ;;  %v244_v41 = vadd.s32 48, %v2112_v2 }
  0x28   : > { %1954 = vmatpush3.bf16.msra.mxu1 %v2021_v26  ;;  %1853 = vmatprep.subr.bf16.mxu0 %v2023_v13  ;;  %3596 = vst [vmem:[#allocation11_spill] sm:$0xff] %v2513_v58  ;;  %vm337_vm0 = vmand %vm3597_vm12, %vm2361_vm4  ;;  %v243_v26 = vadd.s32 40, %v2112_v2 }
  0x29   : > { %678 = vrot.lane.b32.xlu1 %v669_v12, %s2070_s14  ;;  %v3509_v12 = vrot.slane %v2345_v8, 7  ;;  %1955 = vmatprep.subr.bf16.mxu1 %v2024_v32 }
  0x2a   : > { %676 = vrot.lane.b32.xlu0 %v668_v36, %s2070_s14  ;;  %v490_v36 = vmul.f32 %v2471_v5, %v2171_v23 }
  0x2b   : > { %1854 = vmatpush3.bf16.msra.mxu0 %v2025_v42  ;;  %v2541_v42 = vsel %vm337_vm0, 1.0, %v3515_v17  ;;  %vm3601_vm0 = vcmp.le.s32.totalorder %v2372_v39, 6 }
  0x2c   : > { %1956 = vmatpush3.bf16.msra.mxu1 %v2024_v32  ;;  %3598 = vst [vmem:[#allocation12_spill] sm:$0xff] %v2541_v42  ;;  %v2544_v32 = vsel %vm336_vm7, 1.0, %v3515_v17  ;;  %v539_v45 = vmul.f32 %v2541_v42, %v2444_v62  ;;  %v2570_v56 = vsel %vm3601_vm0, 1.0, %v3515_v17  ;;  %vm3605_vm7 = vcmp.le.s32.totalorder %v2140_v10, 6 }
  0x2d   : > { %578 = vrot.lane.b32.xlu1 %v569_v50, %s2070_s14  ;;  %v489_v50 = vmul.f32 %v2481_v20, %v2153_v16  ;;  %1957 = vmatprep.subr.bf16.mxu1 %v2026_v3  ;;  %3599 = vst [vmem:[#allocation13_spill] sm:$0xff] %v2544_v32  ;;  %v538_v27 = vmul.f32 %v2544_v32, %v2218_v34  ;;  %3602 = vst [vmem:[#allocation15_spill] sm:$0xff] %v2570_v56 }
  0x2e   : > { %576 = vrot.lane.b32.xlu0 %v568_v52, %s2070_s14  ;;  %v2510_v52 = vsel %vm3513_vm2, %v465_v9, %v3509_v12  ;;  %v670_v25 = vmul.f32 %v2570_v56, %v2318_v59 }
  0x30   : > { %1958 = vmatpush3.bf16.msra.mxu1 %v2026_v3  ;;  %v2563_v3 = vld [vmem:[%s2138_s9 + $0x30] sm:$0xff] }
  0x31   : > { %618 = vrot.lane.b32.xlu1 %v607_v1, %s2068_s10  ;;  %v2519_v1 = vsel %vm3513_vm2, %v464_v38, %v465_v9  ;;  %v242_v38 = vadd.s32 32, %v2112_v2  ;;  %v259_v9 = vshra.s32 %v243_v26, 3  ;;  %vm2581_vm2 = vmand %vm3605_vm7, %vm2142_vm1  ;;  %vm3612_vm1 = vcmp.le.s32.totalorder %v2168_v22, 6 }
  0x32   : > { %616 = vrot.lane.b32.xlu0 %v606_v4, %s2068_s10  ;;  %v639_v4 = vmul.f32 %v2504_v51, %v2510_v52  ;;  %v638_v13 = vmul.f32 %v2513_v58, %v2519_v1  ;;  %vm2600_vm7 = vmand %vm3612_vm1, %vm2178_vm5  ;;  %v2660_v51 = vadd.s32 56, %v2112_v2  ;;  %v3629_v58 = vrot.slane %v2563_v3, 1 }
  0x33   : > { %v258_v7 = vshra.s32 %v242_v38, 3  ;;  %v250_v12 = vand.u32 7, %v242_v38  ;;  %v2554_v37 = vand.u32 7, %v259_v9  ;;  %vm2616_vm5 = vmand %vm3617_vm14, %vm2392_vm6  ;;  %v260_v22 = vshra.s32 %v244_v41, 3 }
  0x34   : > { %v253_v5 = vand.u32 7, %v2660_v51 }
  0x35   : > { %501 = vrot.lane.b32.xlu1 %v490_v36, %s2068_s10  ;;  %v251_v36 = vand.u32 7, %v243_v26  ;;  %v2560_v26 = vld [vmem:[%s2138_s9 + $0x28] sm:$0xff]  ;;  %vm2591_vm0 = vcmp.ge.s32.totalorder %v250_v12, 1  ;;  %vm2607_vm15 = vcmp.le.s32.totalorder %v250_v12, 6  ;;  %vm3522_vm12 = vcmp.ge.s32.totalorder %v2554_v37, 1 }
  0x36   : > { %499 = vrot.lane.b32.xlu0 %v489_v50, %s2068_s10  ;;  %v2552_v50 = vsel %vm3514_vm9, 1.0, %v3515_v17  ;;  %v524_v11 = vrot.slane %v2560_v26, 1  ;;  %vm3623_vm14 = vcmp.le.s32.totalorder %v2554_v37, 6 }
  0x37   : > { %3600 = vst [vmem:[#allocation14_spill] sm:$0xff] %v2552_v50  ;;  %vm2572_vm10 = vcmp.ge.s32.totalorder %v251_v36, 1  ;;  %vm2587_vm9 = vcmp.le.s32.totalorder %v251_v36, 6 }
  0x38   : > { %vm403_vm1 = vmand %vm3623_vm14, %vm2572_vm10  ;;  %vm3626_vm14 = vcmp.le.s32.totalorder %v2366_v35, 6 }
  0x39   : > { %650 = vrot.lane.b32.xlu1 %v639_v4, %s2069_s25  ;;  %v2565_v4 = vand.u32 7, %v258_v7  ;;  %v671_v7 = vmul.f32 %v2552_v50, %v2345_v8 }
  0x3a   : > { %648 = vrot.lane.b32.xlu0 %v638_v13, %s2069_s25 }
  0x3b   : > { %vm274_vm6 = vcmp.ge.s32.totalorder %v2565_v4, 1 }
  0x3d   : > { %550 = vrot.lane.b32.xlu1 %v539_v45, %s2069_s25  ;;  %v3620_v45 = vmov 0.0  }
  0x3e   : > { %548 = vrot.lane.b32.xlu0 %v538_v27, %s2069_s25  ;;  %v2626_v12 = vsel %vm2396_vm3, 1.0, %v3620_v45  ;;  %v2631_v49 = vsel %vm2420_vm11, 1.0, %v3620_v45  ;;  %v2641_v39 = vsel %vm2587_vm9, 1.0, %v3620_v45  ;;  %v467_v27 = vrot.slane %v2560_v26, 7 }
  0x3f   : > { %3621 = vst [vmem:[#allocation16_spill] sm:$0xff] %v2626_v12  ;;  %3622 = vst [vmem:[#allocation17_spill] sm:$0xff] %v2631_v49  ;;  %vm3625_vm3 = vcmp.le.s32.totalorder %v2565_v4, 6  ;;  %v2651_v19 = vsel %vm2607_vm15, 1.0, %v3620_v45  ;;  %v2656_v55 = vsel %vm3522_vm12, 1.0, %v3620_v45  ;;  %v571_v50 = vmul.f32 %v2626_v12, %v2519_v1 }
  0x40   : > { %3624 = vst [vmem:[#allocation18_spill] sm:$0xff] %v2641_v39  ;;  %vm402_vm11 = vmand %vm3625_vm3, %vm2591_vm0  ;;  %vm3630_vm12 = vcmp.lt.s32.totalorder %v2112_v2, 7  ;;  %v2682_v28 = vsel %vm274_vm6, 1.0, %v3620_v45  ;;  %v2685_v35 = vsel %vm403_vm1, 1.0, %v3620_v45  ;;  %v2704_v61 = vsel %vm2581_vm2, 1.0, %v3620_v45 }
  0x41   : > { %vm2666_vm3 = vmand %vm3626_vm14, %vm2361_vm4  ;;  %682 = vrot.lane.b32.xlu1 %v671_v7, %s2070_s14  ;;  %v2677_v36 = vsel %vm3630_vm12, %v524_v11, %v3629_v58  ;;  %3631 = vst [vmem:[#allocation19_spill] sm:$0xff] %v2685_v35  ;;  %vm3632_vm4 = vcmp.ge.s32.totalorder %v2554_v37, 1  ;;  %v570_v58 = vmul.f32 %v2631_v49, %v2261_v44  ;;  %v2699_v12 = vsel %vm402_vm11, 1.0, %v3620_v45 }
  0x42   : > { %vm2691_vm14 = vmand %vm3632_vm4, %vm2572_vm10  ;;  %680 = vrot.lane.b32.xlu0 %v670_v25, %s2070_s14  ;;  %3635 = vst [vmem:[#allocation20_spill] sm:$0xff] %v2699_v12  ;;  %v3639_v25 = vrot.slane %v2345_v8, 1  ;;  %vm3640_vm1 = vcmp.lt.s32.totalorder %v2112_v2, 7  ;;  %v2722_v9 = vsel %vm2600_vm7, 1.0, %v3620_v45  ;;  %v704_v32 = vmul.f32 %v2704_v61, %v2218_v34 }
  0x43   : > { %3636 = vst [vmem:[#allocation21_spill] sm:$0xff] %v2704_v61  ;;  %vm2710_vm12 = vmand %vm274_vm6, %vm2591_vm0  ;;  %v609_v30 = vmul.f32 %v2641_v39, %v2677_v36  ;;  %v2741_v10 = vsel %vm2616_vm5, 1.0, %v3620_v45  ;;  %v2746_v34 = vsel %vm2666_vm3, 1.0, %v3620_v45  ;;  %v492_v56 = vmul.f32 %v2656_v55, %v2345_v8 }
  0x44   : > { %v530_v49 = vsel %vm3640_vm1, %v3639_v25, %v524_v11  ;;  %3641 = vst [vmem:[#allocation22_spill] sm:$0xff] %v2722_v9  ;;  %vm3642_vm2 = vmmov %vm3632_vm4  ;;  %v705_v11 = vmul.f32 %v2722_v9, %v2444_v62  ;;  %v261_v62 = vshra.s32 %v2660_v51, 3  ;;  %v706_v39 = vmul.f32 %v2741_v10, %v2417_v54 }
  0x45   : > { %vm2732_vm11 = vmand %vm3642_vm2, %vm2587_vm9  ;;  %3645 = vst [vmem:[#allocation23_spill] sm:$0xff] %v2741_v10  ;;  %582 = vrot.lane.b32.xlu1 %v571_v50, %s2070_s14  ;;  %v707_v46 = vmul.f32 %v2746_v34, %v530_v49  ;;  %v608_v50 = vmul.f32 %v2651_v19, %v530_v49  ;;  %v491_v10 = vmul.f32 %v2682_v28, %v2318_v59  ;;  %vm3650_vm5 = vcmp.lt.s32.totalorder %v2112_v2, 1 }
  0x46   : > { %3646 = vst [vmem:[#allocation24_spill] sm:$0xff] %v2746_v34  ;;  %vm2753_vm7 = vmand %vm274_vm6, %vm2607_vm15  ;;  %580 = vrot.lane.b32.xlu0 %v570_v58, %s2070_s14  ;;  %v712_v9 = vpack.c.bf16 %v705_v11, %v704_v32  ;;  %v3649_v34 = vrot.slane %v2563_v3, 7  ;;  %v3651_v32 = vrot.slane %v2345_v8, 7  ;;  %vm3653_vm3 = vcmp.le.s32.totalorder %v2554_v37, 6 }
  0x47   : > { %v713_v61 = vpack.c.bf16 %v707_v46, %v706_v39  ;;  %vm3652_vm6 = vmmov %vm3650_vm5  ;;  %v2787_v39 = vsel %vm2732_vm11, 1.0, %v3620_v45  ;;  %v252_v11 = vand.u32 7, %v244_v41  ;;  %v2805_v46 = vand.u32 7, %v260_v22 }
  0x48   : > { %1959 = vmatprep.mubr.bf16.mxu1 %v712_v9  ;;  %v2773_v58 = vsel %vm3650_vm5, %v467_v27, %v3649_v34  ;;  %v2803_v34 = vand.u32 7, %v261_v62  ;;  %vm3655_vm4 = vcmp.le.s32.totalorder %v2565_v4, 6 }
  0x49   : > { %622 = vrot.lane.b32.xlu1 %v609_v30, %s2068_s10  ;;  %1960 = vmatmul.mubr.bf16.vlgmr.msra.gmra.mrb[0].mxu1 %v713_v61  ;;  %v2779_v30 = vsel %vm3652_vm6, %v3651_v32, %v467_v27  ;;  %v641_v61 = vmul.f32 %v2685_v35, %v2773_v58  ;;  %v2795_v27 = vsel %vm2753_vm7, 1.0, %v3620_v45  ;;  %v2816_v41 = vsel %vm3655_vm4, 1.0, %v3620_v45  ;;  %vm3656_vm1 = vmmov %vm3655_vm4 }
  0x4a   : > { %620 = vrot.lane.b32.xlu0 %v608_v50, %s2068_s10  ;;  %v640_v9 = vmul.f32 %v2699_v12, %v2779_v30  ;;  %v540_v25 = vmul.f32 %v2795_v27, %v2417_v54  ;;  %vm442_vm2 = vmand %vm3656_vm1, %vm2607_vm15  ;;  %vm2823_vm11 = vcmp.le.s32.totalorder %v252_v11, 6  ;;  %v3659_v54 = vrot.slane %v2147_v14, 1 }
  0x4b   : > { %vm3661_vm7 = vcmp.lt.s32.totalorder %v2112_v2, 7  ;;  %vm3537_vm5 = vcmp.le.s32.totalorder %v2805_v46, 6  ;;  %vm3662_vm6 = vmmov %vm3653_vm3  ;;  %v2839_v24 = vsel %vm442_vm2, 1.0, %v3620_v45  ;;  %vm3542_vm4 = vcmp.le.s32.totalorder %v2803_v34, 6 }
  0x4c   : > { %vm443_vm15 = vmand %vm3662_vm6, %vm2587_vm9  ;;  %3663 = vst [vmem:[#allocation26_spill] sm:$0xff] %v2839_v24  ;;  %v708_v32 = vmul.f32 %v2839_v24, %v2677_v36  ;;  %vm277_vm1 = vcmp.ge.s32.totalorder %v2803_v34, 1  ;;  %vm2856_vm2 = vcmp.ge.s32.totalorder %v253_v5, 1  ;;  %vm276_vm6 = vcmp.ge.s32.totalorder %v2805_v46, 1 }
  0x4d   : > { %505 = vrot.lane.b32.xlu1 %v492_v56, %s2068_s10  ;;  %v2800_v56 = vsel %vm3653_vm3, 1.0, %v3620_v45  ;;  %vm2841_vm3 = vcmp.le.s32.totalorder %v253_v5, 6  ;;  %v2847_v22 = vsel %vm443_vm15, 1.0, %v3620_v45  ;;  %vm444_vm9 = vmand %vm3537_vm5, %vm2823_vm11  ;;  %vm2870_vm15 = vcmp.ge.s32.totalorder %v252_v11, 1 }
  0x4e   : > { %503 = vrot.lane.b32.xlu0 %v491_v10, %s2068_s10  ;;  %3654 = vst [vmem:[#allocation25_spill] sm:$0xff] %v2800_v56  ;;  %v541_v10 = vmul.f32 %v2787_v39, %v530_v49  ;;  %v673_v50 = vmul.f32 %v2800_v56, %v2563_v3  ;;  %v3660_v49 = vrot.slane %v2563_v3, 1  ;;  %3666 = vst [vmem:[#allocation27_spill] sm:$0xff] %v2847_v22  ;;  %v2924_v17 = vsel %vm2823_vm11, 1.0, %v3620_v45 }
  0x4f   : > { %vm2878_vm5 = vmand %vm277_vm1, %vm2856_vm2  ;;  %v672_v11 = vmul.f32 %v2816_v41, %v2560_v26  ;;  %3679 = vst [vmem:[#allocation32_spill] sm:$0xff] %v2924_v17 }
  0x50   : > { %v528_v62 = vsel %vm3661_vm7, %v3660_v49, %v3659_v54  ;;  %vm445_vm7 = vmand %vm3542_vm4, %vm2841_vm3  ;;  %v2893_v49 = vsel %vm2572_vm10, 1.0, %v3620_v45 }
  0x51   : > { %654 = vrot.lane.b32.xlu1 %v641_v61, %s2069_s25  ;;  %v709_v13 = vmul.f32 %v2847_v22, %v528_v62  ;;  %v2866_v61 = vsel %vm444_vm9, 1.0, %v3620_v45  ;;  %v2883_v54 = vsel %vm445_vm7, 1.0, %v3620_v45  ;;  %3675 = vst [vmem:[#allocation30_spill] sm:$0xff] %v2893_v49  ;;  %vm2901_vm9 = vmand %vm276_vm6, %vm2870_vm15 }
  0x52   : > { %652 = vrot.lane.b32.xlu0 %v640_v9, %s2069_s25  ;;  %3669 = vst [vmem:[#allocation28_spill] sm:$0xff] %v2866_v61  ;;  %3674 = vst [vmem:[#allocation29_spill] sm:$0xff] %v2883_v54  ;;  %v711_v22 = vmul.f32 %v2883_v54, %v2191_v29  ;;  %v573_v29 = vmul.f32 %v2893_v49, %v2779_v30 }
  0x53   : > { %v714_v35 = vpack.c.bf16 %v709_v13, %v708_v32  ;;  %v2919_v13 = vsel %vm2841_vm3, 1.0, %v3620_v45  ;;  %vm405_vm10 = vmand %vm3542_vm4, %vm2856_vm2 }
  0x54   : > { %3678 = vst [vmem:[#allocation31_spill] sm:$0xff] %v2919_v13  ;;  %vm341_vm4 = vmand %vm277_vm1, %vm2841_vm3  ;;  %vm3692_vm3 = vcmp.le.s32.totalorder %v2805_v46, 6 }
  0x55   : > { %554 = vrot.lane.b32.xlu1 %v541_v10, %s2069_s25  ;;  %v710_v10 = vmul.f32 %v2866_v61, %v2312_v57  ;;  %1963 = vmatprep.mubr.bf16.mxu1 %v714_v35  ;;  %v611_v35 = vmul.f32 %v2919_v13, %v2312_v57 }
  0x56   : > { %552 = vrot.lane.b32.xlu0 %v540_v25, %s2069_s25  ;;  %v2908_v25 = vsel %vm2591_vm0, 1.0, %v3620_v45  ;;  %vm3682_vm0 = vcmp.le.s32.totalorder %v2805_v46, 6  ;;  %v3015_v46 = vsel %vm2870_vm15, 1.0, %v3620_v45 }
  0x57   : > { %v715_v38 = vpack.c.bf16 %v711_v22, %v710_v10  ;;  %v572_v32 = vmul.f32 %v2908_v25, %v2510_v52  ;;  %v2934_v22 = vsel %vm277_vm1, 1.0, %v3620_v45  ;;  %v2939_v10 = vsel %vm276_vm6, 1.0, %v3620_v45  ;;  %vm404_vm7 = vmand %vm3682_vm0, %vm2870_vm15  ;;  %3695 = vst [vmem:[#allocation42_spill] sm:$0xff] %v3015_v46 }
  0x58   : > { %3680 = vst [vmem:[#allocation33_spill] sm:$0xff] %v2934_v22  ;;  %3681 = vst [vmem:[#allocation34_spill] sm:$0xff] %v2939_v10  ;;  %v494_v57 = vmul.f32 %v2934_v22, %v2563_v3  ;;  %vm3687_vm0 = vcmp.lt.s32.totalorder %v2112_v2, 1 }
  0x59   : > { %686 = vrot.lane.b32.xlu1 %v673_v50, %s2070_s14  ;;  %1964 = vmatmul.mubr.bf16.gmra.mrb[4].mxu1 %v715_v38  ;;  %v610_v50 = vmul.f32 %v2924_v17, %v528_v62  ;;  %v2956_v38 = vsel %vm405_vm10, 1.0, %v3620_v45  ;;  %v3686_v17 = vrot.slane %v2563_v3, 7  ;;  %vm340_vm10 = vmand %vm276_vm6, %vm2823_vm11  ;;  %vm3690_vm11 = vcmp.le.s32.totalorder %v2803_v34, 6 }
  0x5a   : > { %684 = vrot.lane.b32.xlu0 %v672_v11, %s2070_s14  ;;  %v493_v11 = vmul.f32 %v2939_v10, %v2560_v26  ;;  %3683 = vst [vmem:[#allocation35_spill] sm:$0xff] %v2956_v38  ;;  %v2984_v4 = vsel %vm340_vm10, 1.0, %v3620_v45  ;;  %v3010_v34 = vsel %vm2856_vm2, 1.0, %v3620_v45  ;;  %vm3709_vm1 = vmmov %vm3687_vm0 }
  0x5b   : > { %3689 = vst [vmem:[#allocation38_spill] sm:$0xff] %v2984_v4  ;;  %3694 = vst [vmem:[#allocation41_spill] sm:$0xff] %v3010_v34 }
  0x5c   : > { %vm3714_vm2 = vmmov %vm3687_vm0 }
  0x5d   : > { %586 = vrot.lane.b32.xlu1 %v573_v29, %s2070_s14  ;;  %v2959_v29 = vsel %vm404_vm7, 1.0, %v3620_v45  ;;  %vm3726_vm7 = vmmov %vm3687_vm0 }
  0x5e   : > { %584 = vrot.lane.b32.xlu0 %v572_v32, %s2070_s14  ;;  %3684 = vst [vmem:[#allocation36_spill] sm:$0xff] %v2959_v29  ;;  %v3685_v32 = vrot.slane %v2147_v14, 7 }
  0x61   : > { %626 = vrot.lane.b32.xlu1 %v611_v35, %s2068_s10  ;;  %v471_v35 = vsel %vm3687_vm0, %v3686_v17, %v3685_v32  ;;  %v2981_v17 = vsel %vm341_vm4, 1.0, %v3620_v45  ;;  %v2999_v32 = vsel %vm3692_vm3, 1.0, %v3620_v45  ;;  %vm3736_vm3 = vmmov %vm3709_vm1 }
  0x62   : > { %624 = vrot.lane.b32.xlu0 %v610_v50, %s2068_s10  ;;  %v643_v50 = vmul.f32 %v2956_v38, %v2385_v40  ;;  %v642_v13 = vmul.f32 %v2959_v29, %v471_v35  ;;  %3688 = vst [vmem:[#allocation37_spill] sm:$0xff] %v2981_v17  ;;  %v543_v51 = vmul.f32 %v2981_v17, %v528_v62  ;;  %3693 = vst [vmem:[#allocation40_spill] sm:$0xff] %v2999_v32 }
  0x65   : > { %509 = vrot.lane.b32.xlu1 %v494_v57, %s2068_s10  ;;  %v542_v57 = vmul.f32 %v2984_v4, %v2677_v36  ;;  %v674_v36 = vmul.f32 %v2999_v32, %v2147_v14 }
  0x66   : > { %507 = vrot.lane.b32.xlu0 %v493_v11, %s2068_s10  ;;  %v2994_v11 = vsel %vm3690_vm11, 1.0, %v3620_v45 }
  0x67   : > { %3691 = vst [vmem:[#allocation39_spill] sm:$0xff] %v2994_v11  ;;  %v675_v62 = vmul.f32 %v2994_v11, %v2150_v15 }
  0x69   : > { %658 = vrot.lane.b32.xlu1 %v643_v50, %s2069_s25  ;;  %v574_v50 = vmul.f32 %v3015_v46, %v2773_v58 }
  0x6a   : > { %656 = vrot.lane.b32.xlu0 %v642_v13, %s2069_s25  ;;  %v575_v13 = vmul.f32 %v3010_v34, %v471_v35 }
  0x6d   : > { %558 = vrot.lane.b32.xlu1 %v543_v51, %s2069_s25 }
  0x6e   : > { %556 = vrot.lane.b32.xlu0 %v542_v57, %s2069_s25 }
  0x71   : > { %690 = vrot.lane.b32.xlu1 %v675_v62, %s2070_s14  ;;  %v3027_v62 = vsel %vm2253_vm13, 1.0, %v3620_v45  ;;  %vm3699_vm13 = vnez %v3593_v0 }
  0x72   : > { %688 = vrot.lane.b32.xlu0 %v674_v36, %s2070_s14  ;;  %3696 = vst [vmem:[#allocation43_spill] sm:$0xff] %v3027_v62  ;;  %v3032_v36 = vsel %vm2203_vm8, 1.0, %v3620_v45  ;;  %vm3698_vm8 = vnez %v3590_v60 }
  0x73   : > { %3697 = vst [vmem:[#allocation44_spill] sm:$0xff] %v3032_v36  ;;  %v479_v17 = vmul.f32 %v3032_v36, %v471_v35 }
  0x75   : > { %590 = vrot.lane.b32.xlu1 %v575_v13, %s2070_s14 }
  0x76   : > { %588 = vrot.lane.b32.xlu0 %v574_v50, %s2070_s14  ;;  %v480_v50 = vmul.f32 %v3027_v62, %v2385_v40 }
  0x8b   : > { %v496_v14 = vpop.permute.xlu1 %495 }
  0x8c   : > { %v613_v37 = vpop.permute.xlu0 %612  ;;  %v511_v31 = vadd.f32 %v496_v14, %v479_v17 }
  0x8d   : > { %v628_v38 = vadd.f32 %v613_v37, %v2150_v15 }
  0x8f   : > { %v498_v51 = vpop.permute.xlu1 %497 }
  0x90   : > { %v615_v57 = vpop.permute.xlu0 %614  ;;  %v512_v11 = vadd.f32 %v498_v51, %v480_v50 }
  0x91   : > { %v629_v13 = vadd.f32 %v615_v57, %v2153_v16 }
  0x93   : > { %v647_v9 = vpop.permute.xlu1 %646 }
  0x94   : > { %v645_v29 = vpop.permute.xlu0 %644  ;;  %v661_v32 = vadd.f32 %v647_v9, %v629_v13 }
  0x95   : > { %v660_v43 = vadd.f32 %v645_v29, %v628_v38 }
  0x97   : > { %v547_v46 = vpop.permute.xlu1 %546 }
  0x98   : > { %v545_v34 = vpop.permute.xlu0 %544  ;;  %v561_v54 = vadd.f32 %v547_v46, %v512_v11 }
  0x99   : > { %v560_v56 = vadd.f32 %v545_v34, %v511_v31 }
  0x9b   : > { %v679_v4 = vpop.permute.xlu1 %678 }
  0x9c   : > { %v693_v10 = vadd.f32 %v679_v4, %v661_v32  ;;  %v677_v22 = vpop.permute.xlu0 %676 }
  0x9d   : > { %v692_v24 = vadd.f32 %v677_v22, %v660_v43  ;;  %v3042_v22 = vsel %vm3698_vm8, 1.0, %v3620_v45  ;;  %vm3741_vm8 = vmmov %vm3709_vm1 }
  0x9f   : > { %v579_v16 = vpop.permute.xlu1 %578  ;;  %v700_v57 = vpack.c.bf16 %v693_v10, %v692_v24  ;;  %v3047_v24 = vsel %vm3699_vm13, 1.0, %v3620_v45  ;;  %vm3752_vm13 = vmmov %vm3709_vm1 }
  0xa0   : > { %v593_v49 = vadd.f32 %v579_v16, %v561_v54  ;;  %v577_v12 = vpop.permute.xlu0 %576  ;;  %v482_v54 = vmul.f32 %v3042_v22, %v2261_v44  ;;  %v481_v17 = vmul.f32 %v3047_v24, %v2278_v48 }
  0xa1   : > { %v592_v40 = vadd.f32 %v577_v12, %v560_v56  ;;  %947 = vmatprep.mubr.bf16.mxu0 %v700_v57 }
  0xa3   : > { %v600_v62 = vpack.c.bf16 %v593_v49, %v592_v40  ;;  %v619_v35 = vpop.permute.xlu1 %618  ;;  %v3058_v40 = vsel %vm2691_vm14, 1.0, %v3620_v45  ;;  %vm3700_vm14 = vcmp.lt.s32.totalorder %v2112_v2, 7  ;;  %v3756_v2 = vld [vmem:[#allocation42_spill] sm:$0xff] }
  0xa4   : > { %v617_v36 = vpop.permute.xlu0 %616  ;;  %v631_v56 = vadd.f32 %v619_v35, %v2318_v59  ;;  %v3063_v35 = vsel %vm2710_vm12, 1.0, %v3620_v45  ;;  %vm3701_vm12 = vmmov %vm3687_vm0 }
  0xa5   : > { %948 = vmatmul.mubr.bf16.vlgmr.msra.gmra.mrb[0].mxu0 %v600_v62  ;;  %v630_v10 = vadd.f32 %v617_v36, %v2171_v23 }
  0xa7   : > { %v502_v15 = vpop.permute.xlu1 %501 }
  0xa8   : > { %v500_v38 = vpop.permute.xlu0 %499  ;;  %v514_v32 = vadd.f32 %v502_v15, %v482_v54 }
  0xa9   : > { %v513_v46 = vadd.f32 %v500_v38, %v481_v17 }
  0xab   : > { %v651_v29 = vpop.permute.xlu1 %650 }
  0xac   : > { %v649_v37 = vpop.permute.xlu0 %648  ;;  %v663_v60 = vadd.f32 %v651_v29, %v631_v56  ;;  %v484_v29 = vmul.f32 %v3058_v40, %v2510_v52  ;;  %v483_v56 = vmul.f32 %v3063_v35, %v2519_v1 }
  0xad   : > { %v662_v4 = vadd.f32 %v649_v37, %v630_v10 }
  0xaf   : > { %v551_v12 = vpop.permute.xlu1 %550 }
  0xb0   : > { %v549_v49 = vpop.permute.xlu0 %548  ;;  %v563_v51 = vadd.f32 %v551_v12, %v514_v32 }
  0xb1   : > { %v562_v9 = vadd.f32 %v549_v49, %v513_v46 }
  0xb3   : > { %v683_v11 = vpop.permute.xlu1 %682 }
  0xb4   : > { %v695_v34 = vadd.f32 %v683_v11, %v663_v60  ;;  %v681_v0 = vpop.permute.xlu0 %680 }
  0xb5   : > { %v694_v14 = vadd.f32 %v681_v0, %v662_v4 }
  0xb7   : > { %v701_v59 = vpack.c.bf16 %v695_v34, %v694_v14  ;;  %v583_v62 = vpop.permute.xlu1 %582 }
  0xb8   : > { %v595_v13 = vadd.f32 %v583_v62, %v563_v51  ;;  %v581_v44 = vpop.permute.xlu0 %580 }
  0xb9   : > { %v594_v50 = vadd.f32 %v581_v44, %v562_v9  ;;  %955 = vmatprep.mubr.bf16.mxu0 %v701_v59  ;;  %v3079_v44 = vsel %vm2901_vm9, 1.0, %v3620_v45  ;;  %vm3723_vm9 = vmmov %vm3687_vm0 }
  0xba   : > { %v485_v5 = vmul.f32 %v3079_v44, %v2779_v30  ;;  %v2027_v30 = vld [vmem:[%s3499_s3 + $0x80] sm:$0xff]  }
  0xbb   : > { %v601_v23 = vpack.c.bf16 %v595_v13, %v594_v50  ;;  %v623_v36 = vpop.permute.xlu1 %622  ;;  %v3074_v13 = vsel %vm2878_vm5, 1.0, %v3620_v45  ;;  %1967 = vmatprep.subr.bf16.mxu1 %v2027_v30  ;;  %vm3703_vm5 = vmmov %vm3700_vm14 }
  0xbc   : > { %v621_v43 = vpop.permute.xlu0 %620  ;;  %v633_v38 = vadd.f32 %v623_v36, %v2560_v26  ;;  %1968 = vmatpush3.bf16.msra.mxu1 %v2027_v30  ;;  %vm3705_vm4 = vmmov %vm3703_vm5 }
  0xbd   : > { %956 = vmatmul.mubr.bf16.gmra.mrb[4].mxu0 %v601_v23  ;;  %v632_v12 = vadd.f32 %v621_v43, %v2345_v8  ;;  %v3082_v23 = vld [vmem:[%s2138_s9 + $0x38] sm:$0xff]  ;;  %v486_v43 = vmul.f32 %v3074_v13, %v2773_v58  ;;  %vm3719_vm6 = vmmov %vm3705_vm4 }
  0xbe   : > { %vm3720_vm15 = vmmov %vm3705_vm4 }
  0xbf   : > { %v506_v48 = vpop.permute.xlu1 %505  ;;  %vm3731_vm0 = vmmov %vm3705_vm4 }
  0xc0   : > { %v504_v31 = vpop.permute.xlu0 %503  ;;  %v516_v10 = vadd.f32 %v506_v48, %v484_v29  ;;  %vm3733_vm10 = vmmov %vm3731_vm0 }
  0xc1   : > { %v515_v60 = vadd.f32 %v504_v31, %v483_v56  ;;  %vm3734_vm11 = vmmov %vm3731_vm0 }
  0xc3   : > { %v655_v16 = vpop.permute.xlu1 %654 }
  0xc4   : > { %v653_v57 = vpop.permute.xlu0 %652  ;;  %v665_v7 = vadd.f32 %v655_v16, %v633_v38 }
  0xc5   : > { %v664_v54 = vadd.f32 %v653_v57, %v632_v12 }
  0xc7   : > { %v555_v15 = vpop.permute.xlu1 %554 }
  0xc8   : > { %v553_v37 = vpop.permute.xlu0 %552  ;;  %v565_v11 = vadd.f32 %v555_v15, %v516_v10 }
  0xc9   : > { %v564_v32 = vadd.f32 %v553_v37, %v515_v60  ;;  %v2028_v60 = vld [vmem:[%s3499_s3 + $0x88] sm:$0xff]  }
  0xca   : > { %1969 = vmatprep.subr.bf16.mxu1 %v2028_v60 }
  0xcb   : > { %v687_v49 = vpop.permute.xlu1 %686  ;;  %1970 = vmatpush3.bf16.msra.mxu1 %v2028_v60 }
  0xcc   : > { %v697_v17 = vadd.f32 %v687_v49, %v665_v7  ;;  %v685_v42 = vpop.permute.xlu0 %684 }
  0xcd   : > { %v696_v4 = vadd.f32 %v685_v42, %v664_v54 }
  0xcf   : > { %v702_v26 = vpack.c.bf16 %v697_v17, %v696_v4  ;;  %v587_v34 = vpop.permute.xlu1 %586 }
  0xd0   : > { %v597_v52 = vadd.f32 %v587_v34, %v565_v11  ;;  %v585_v0 = vpop.permute.xlu0 %584  ;;  %v2031_v34 = vld [vmem:[%s3499_s3 + $0xa0] sm:$0xff]  }
  0xd1   : > { %v596_v46 = vadd.f32 %v585_v0, %v564_v32  ;;  %963 = vmatprep.mubr.bf16.mxu0 %v702_v26  ;;  %v2029_v32 = vld [vmem:[%s3499_s3 + $0x90] sm:$0xff]   ;;  %v2030_v26 = vld [vmem:[%s3499_s3 + $0x98] sm:$0xff]  }
  0xd2   : > { %1971 = vmatprep.subr.bf16.mxu1 %v2029_v32 }
  0xd3   : > { %v602_v8 = vpack.c.bf16 %v597_v52, %v596_v46  ;;  %v627_v14 = vpop.permute.xlu1 %626  ;;  %1972 = vmatpush3.bf16.msra.mxu1 %v2029_v32  ;;  %v2032_v46 = vld [vmem:[%s3499_s3 + $0xa8] sm:$0xff]  }
  0xd4   : > { %v625_v1 = vpop.permute.xlu0 %624  ;;  %v635_v36 = vadd.f32 %v3082_v23, %v627_v14  ;;  %1973 = vmatprep.subr.bf16.mxu1 %v2030_v26 }
  0xd5   : > { %964 = vmatmul.mubr.bf16.gmra.mrb[8].mxu0 %v602_v8  ;;  %v634_v31 = vadd.f32 %v625_v1, %v2563_v3  ;;  %v2033_v1 = vld [vmem:[%s3499_s3 + $0xb0] sm:$0xff]  }
  0xd7   : > { %v510_v51 = vpop.permute.xlu1 %509  ;;  %1974 = vmatpush3.bf16.msra.mxu1 %v2030_v26 }
  0xd8   : > { %v508_v9 = vpop.permute.xlu0 %507  ;;  %v518_v61 = vadd.f32 %v510_v51, %v486_v43  ;;  %1975 = vmatprep.subr.bf16.mxu1 %v2031_v34  ;;  %v2034_v51 = vld [vmem:[%s3499_s3 + $0xb8] sm:$0xff]  }
  0xd9   : > { %v517_v29 = vadd.f32 %v508_v9, %v485_v5 }
  0xdb   : > { %v659_v59 = vpop.permute.xlu1 %658  ;;  %1976 = vmatpush3.bf16.msra.mxu1 %v2031_v34 }
  0xdc   : > { %v657_v62 = vpop.permute.xlu0 %656  ;;  %v667_v16 = vadd.f32 %v659_v59, %v635_v36  ;;  %1977 = vmatprep.subr.bf16.mxu1 %v2032_v46 }
  0xdd   : > { %v666_v57 = vadd.f32 %v657_v62, %v634_v31  ;;  %v3129_v62 = vld [vmem:[%s3498_s2] ss:$0 sm:$0xff] }
  0xdf   : > { %v559_v50 = vpop.permute.xlu1 %558  ;;  %1978 = vmatpush3.bf16.msra.mxu1 %v2032_v46 }
  0xe0   : > { %v557_v48 = vpop.permute.xlu0 %556  ;;  %v567_v12 = vadd.f32 %v559_v50, %v518_v61  ;;  %1979 = vmatprep.subr.bf16.mxu1 %v2033_v1 }
  0xe1   : > { %v566_v56 = vadd.f32 %v557_v48, %v517_v29 }
  0xe3   : > { %v691_v15 = vpop.permute.xlu1 %690  ;;  %1980 = vmatpush3.bf16.msra.mxu1 %v2033_v1  ;;  %v3702_v1 = vld [vmem:[#allocation15_spill] sm:$0xff] }
  0xe4   : > { %v699_v45 = vadd.f32 %v691_v15, %v667_v16  ;;  %v689_v38 = vpop.permute.xlu0 %688  ;;  %1981 = vmatprep.subr.bf16.mxu1 %v2034_v51 }
  0xe5   : > { %v698_v37 = vadd.f32 %v689_v38, %v666_v57 }
  0xe7   : > { %v703_v7 = vpack.c.bf16 %v699_v45, %v698_v37  ;;  %v591_v54 = vpop.permute.xlu1 %590  ;;  %1982 = vmatpush3.bf16.msra.mxu1 %v2034_v51 }
  0xe8   : > { %v599_v49 = vadd.f32 %v591_v54, %v567_v12  ;;  %v589_v58 = vpop.permute.xlu0 %588 }
  0xe9   : > { %v598_v10 = vadd.f32 %v589_v58, %v566_v56  ;;  %971 = vmatprep.mubr.bf16.mxu0 %v703_v7 }
  0xeb   : > { %v603_v3 = vpack.c.bf16 %v599_v49, %v598_v10 }
  0xed   : > { %972 = vmatmul.mubr.bf16.gmra.mrb[12].mxu0 %v603_v3 }
 0x11c   : > { %v3093_v17 = vpop.f32.mrb[0].mxu1 }
 0x11d   : > { %v1014_v42 = vpop.f32.mrb[1].mxu1 }
 0x11e   : > { %v3098_v4 = vpop.f32.mrb[2].mxu1 }
 0x11f   : > { %v1017_v11 = vpop.f32.mrb[3].mxu1 }
 0x12c   : > { %v3109_v52 = vpop.f32.mrb[4].mxu1 }
 0x12d   : > { %v3111_v0 = vpop.f32.mrb[5].mxu1 }
 0x12e   : > { %v3116_v8 = vpop.f32.mrb[6].mxu1 }
 0x12f   : > { %v3118_v14 = vpop.f32.mrb[7].mxu1 }
 0x178   : > { %v1855_v9 = vpop.f32.mrb[0].mxu0 }
 0x179   : > { %v1856_v59 = vpop.f32.mrb[1].mxu0 }
 0x17a   : > { %v1857_v50 = vadd.f32 %v1856_v59, %v1855_v9  ;;  %v1858_v36 = vpop.f32.mrb[2].mxu0 }
 0x17b   : > { %v1859_v43 = vpop.f32.mrb[3].mxu0 }
 0x17c   : > { %v1860_v48 = vadd.f32 %v1859_v43, %v1858_v36  ;;  %v950_v31 = vadd.f32 %v1857_v50, %v3129_v62  ;;  %v3706_v50 = vld [vmem:[#allocation21_spill] sm:$0xff]  ;;  %v3707_v43 = vld [vmem:[#allocation22_spill] sm:$0xff] }
 0x17e   : > { %v1015_v5 = vadd.f32 %v1014_v42, %v950_v31  ;;  %v953_v16 = vadd.f32 %v1860_v48, %v3129_v62 }
 0x180   : > { %v3133_v57 = vmax.f32 %v1015_v5, 0.0  ;;  %v1018_v15 = vadd.f32 %v1017_v11, %v953_v16 }
 0x182   : > { %v3135_v61 = vmax.f32 %v1018_v15, 0.0  ;;  %v1078_v45 = vmul.f32 %v2212_v33, %v3133_v57  ;;  %v1109_v29 = vrot.slane %v3133_v57, 1  ;;  %v1053_v33 = vrot.slane %v3133_v57, 7  ;;  %v3708_v15 = vld [vmem:[#allocation3_spill] sm:$0xff] }
 0x184   : > { %1087 = vrot.lane.b32.xlu1 %v1078_v45, %s2068_s10  ;;  %v1257_v38 = vmul.f32 %v2341_v6, %v3135_v61  ;;  %v1110_v37 = vrot.slane %v3135_v61, 1  ;;  %v1054_v12 = vrot.slane %v3135_v61, 7  ;;  %v1079_v6 = vmul.f32 %v2481_v20, %v3135_v61 }
 0x186   : > { %1265 = vrot.lane.b32.xlu0 %v1257_v38, %s2070_s14  ;;  %v3150_v56 = vsel %vm3700_vm14, %v1109_v29, %v1110_v37  ;;  %v3161_v54 = vsel %vm3701_vm12, %v1053_v33, %v1054_v12 }
 0x187   : > { %v1126_v7 = vmul.f32 %v2297_v53, %v3150_v56  ;;  %v1158_v49 = vmul.f32 %v2359_v21, %v3161_v54  ;;  %v1193_v58 = vmul.f32 %v2158_v18, %v3150_v56  ;;  %v1225_v20 = vmul.f32 %v2272_v47, %v3161_v54 }
 0x189   : > { %1135 = vrot.lane.b32.xlu1 %v1126_v7, %s2069_s25 }
 0x18a   : > { %1089 = vrot.lane.b32.xlu0 %v1079_v6, %s2068_s10  ;;  %v3711_v6 = vld [vmem:[#allocation4_spill] sm:$0xff] }
 0x18d   : > { %1167 = vrot.lane.b32.xlu1 %v1158_v49, %s2070_s14 }
 0x18e   : > { %1201 = vrot.lane.b32.xlu0 %v1193_v58, %s2068_s10 }
 0x190   : > { %v1861_v53 = vpop.f32.mrb[4].mxu0 }
 0x191   : > { %v1862_v10 = vpop.f32.mrb[5].mxu0 }
 0x192   : > { %v1863_v3 = vadd.f32 %v1862_v10, %v1861_v53  ;;  %1233 = vrot.lane.b32.xlu0 %v1225_v20, %s2069_s25  ;;  %v1864_v30 = vpop.f32.mrb[6].mxu0  ;;  %v3712_v53 = vld [vmem:[#allocation17_spill] sm:$0xff] }
 0x193   : > { %v1865_v42 = vpop.f32.mrb[7].mxu0 }
 0x194   : > { %v958_v60 = vadd.f32 %v1863_v3, %v3129_v62  ;;  %v1866_v21 = vadd.f32 %v1865_v42, %v1864_v30  ;;  %v3713_v30 = vld [vmem:[#allocation12_spill] sm:$0xff] }
 0x196   : > { %v1023_v11 = vadd.f32 %v3093_v17, %v958_v60  ;;  %v961_v18 = vadd.f32 %v1866_v21, %v3129_v62 }
 0x198   : > { %v3177_v32 = vmax.f32 %v1023_v11, 0.0  ;;  %v1026_v26 = vadd.f32 %v3098_v4, %v961_v18  ;;  %v3704_v4 = vld [vmem:[#allocation9_spill] sm:$0xff]  ;;  %v2035_v11 = vld [vmem:[%s3499_s3 + $0x40] sm:$0xff]  }
 0x199   : > { %1891 = vmatprep.subr.bf16.mxu0 %v2035_v11  ;;  %v2042_v11 = vld [vmem:[%s3499_s3 + $0x18] sm:$0xff]  }
 0x19a   : > { %v3180_v34 = vmax.f32 %v1026_v26, 0.0  ;;  %v1258_v47 = vmul.f32 %v2327_v63, %v3177_v32  ;;  %v1111_v46 = vrot.slane %v3177_v32, 1  ;;  %v1080_v59 = vmul.f32 %v3704_v4, %v3177_v32  ;;  %v3716_v4 = vld [vmem:[#allocation16_spill] sm:$0xff] }
 0x19b   : > { %v1055_v31 = vrot.slane %v3177_v32, 7 }
 0x19c   : > { %1267 = vrot.lane.b32.xlu1 %v1258_v47, %s2070_s14  ;;  %v1259_v51 = vmul.f32 %v3702_v1, %v3180_v34  ;;  %v1112_v17 = vrot.slane %v3180_v34, 1  ;;  %v1122_v9 = vsel %vm3703_vm5, %v1110_v37, %v1111_v46  ;;  %v1081_v5 = vmul.f32 %v2682_v28, %v3180_v34  ;;  %v3710_v37 = vld [vmem:[#allocation13_spill] sm:$0xff]  ;;  %v3715_v47 = vld [vmem:[#allocation8_spill] sm:$0xff]  ;;  %v2036_v1 = vld [vmem:[%s3499_s3] sm:$0xff]  }
 0x19d   : > { %v1293_v36 = vmul.f32 %v3706_v50, %v1122_v9  ;;  %v1194_v45 = vmul.f32 %v3708_v15, %v1122_v9  ;;  %v3206_v38 = vsel %vm3709_vm1, %v1054_v12, %v1055_v31  ;;  %v1127_v7 = vmul.f32 %v3710_v37, %v1122_v9  ;;  %1892 = vmatpush3.bf16.msra.mxu0 %v2036_v1  ;;  %v2037_v50 = vld [vmem:[%s3499_s3 + $0x48] sm:$0xff]  }
 0x19e   : > { %1269 = vrot.lane.b32.xlu0 %v1259_v51, %s2070_s14  ;;  %v1121_v63 = vsel %vm3705_vm4, %v1111_v46, %v1112_v17  ;;  %v1226_v49 = vmul.f32 %v3711_v6, %v3206_v38  ;;  %v1056_v28 = vrot.slane %v3180_v34, 7  ;;  %v1159_v20 = vmul.f32 %v3712_v53, %v3206_v38  ;;  %1893 = vmatprep.subr.bf16.mxu0 %v2037_v50  ;;  %v2039_v6 = vld [vmem:[%s3499_s3 + $0x50] sm:$0xff]  }
 0x19f   : > { %v1294_v48 = vmul.f32 %v3707_v43, %v1121_v63  ;;  %v1128_v42 = vmul.f32 %v3713_v30, %v1121_v63  ;;  %v1195_v46 = vmul.f32 %v3715_v47, %v1121_v63  ;;  %v3725_v47 = vld [vmem:[#allocation10_spill] sm:$0xff] }
 0x1a0   : > { %1091 = vrot.lane.b32.xlu1 %v1080_v59, %s2068_s10  ;;  %v3221_v21 = vsel %vm3714_vm2, %v1055_v31, %v1056_v28 }
 0x1a1   : > { %v1301_v16 = vpack.c.bf16 %v1294_v48, %v1293_v36  ;;  %v1160_v59 = vmul.f32 %v3716_v4, %v3221_v21  ;;  %v2038_v48 = vld [vmem:[%s3499_s3 + $0x8] sm:$0xff]  }
 0x1a2   : > { %1093 = vrot.lane.b32.xlu0 %v1081_v5, %s2068_s10  ;;  %v3718_v5 = vld [vmem:[#allocation14_spill] sm:$0xff]  ;;  %1894 = vmatpush3.bf16.msra.mxu0 %v2038_v48 }
 0x1a3   : > { %1983 = vmatprep.mubr.bf16.mxu1 %v1301_v16  ;;  %1895 = vmatprep.subr.bf16.mxu0 %v2039_v6 }
 0x1a4   : > { %1203 = vrot.lane.b32.xlu1 %v1194_v45, %s2068_s10 }
 0x1a6   : > { %1137 = vrot.lane.b32.xlu0 %v1127_v7, %s2069_s25 }
 0x1a8   : > { %v1867_v58 = vpop.f32.mrb[8].mxu0  ;;  %1235 = vrot.lane.b32.xlu1 %v1226_v49, %s2069_s25  ;;  %v2040_v49 = vld [vmem:[%s3499_s3 + $0x10] sm:$0xff]  }
 0x1a9   : > { %v1868_v10 = vpop.f32.mrb[9].mxu0  ;;  %1896 = vmatpush3.bf16.msra.mxu0 %v2040_v49 }
 0x1aa   : > { %v1869_v12 = vadd.f32 %v1868_v10, %v1867_v58  ;;  %v1870_v3 = vpop.f32.mrb[10].mxu0  ;;  %1169 = vrot.lane.b32.xlu0 %v1159_v20, %s2070_s14  ;;  %v3722_v20 = vld [vmem:[#allocation24_spill] sm:$0xff] }
 0x1ab   : > { %v1871_v60 = vpop.f32.mrb[11].mxu0 }
 0x1ac   : > { %v1872_v18 = vadd.f32 %v1871_v60, %v1870_v3  ;;  %v966_v26 = vadd.f32 %v1869_v12, %v3129_v62  ;;  %1139 = vrot.lane.b32.xlu1 %v1128_v42, %s2069_s25  ;;  %v2041_v12 = vld [vmem:[%s3499_s3 + $0x58] sm:$0xff]   ;;  %v3724_v42 = vld [vmem:[#allocation7_spill] sm:$0xff] }
 0x1ad   : > { %1897 = vmatprep.subr.bf16.mxu0 %v2041_v12 }
 0x1ae   : > { %v1031_v51 = vadd.f32 %v3111_v0, %v966_v26  ;;  %v969_v9 = vadd.f32 %v1872_v18, %v3129_v62  ;;  %1205 = vrot.lane.b32.xlu0 %v1195_v46, %s2068_s10  ;;  %v3717_v0 = vld [vmem:[#allocation11_spill] sm:$0xff]  ;;  %1898 = vmatpush3.bf16.msra.mxu0 %v2042_v11  ;;  %v2044_v26 = vld [vmem:[%s3499_s3 + $0x20] sm:$0xff]  }
 0x1af   : > { %v1227_v43 = vmul.f32 %v3717_v0, %v3221_v21 }
 0x1b0   : > { %v3240_v63 = vmax.f32 %v1031_v51, 0.0  ;;  %v1034_v36 = vadd.f32 %v3118_v14, %v969_v9  ;;  %1171 = vrot.lane.b32.xlu1 %v1160_v59, %s2070_s14  ;;  %v2046_v59 = vld [vmem:[%s3499_s3 + $0x28] sm:$0xff]  }
 0x1b2   : > { %v3249_v31 = vmax.f32 %v1034_v36, 0.0  ;;  %1237 = vrot.lane.b32.xlu0 %v1227_v43, %s2069_s25  ;;  %v1260_v16 = vmul.f32 %v3718_v5, %v3240_v63  ;;  %v1113_v15 = vrot.slane %v3240_v63, 1  ;;  %v1057_v7 = vrot.slane %v3240_v63, 7 }
 0x1b3   : > { %v1082_v58 = vmul.f32 %v2656_v55, %v3240_v63 }
 0x1b4   : > { %v1114_v14 = vrot.slane %v3249_v31, 1  ;;  %1271 = vrot.lane.b32.xlu1 %v1260_v16, %s2070_s14  ;;  %v1261_v45 = vmul.f32 %v2816_v41, %v3249_v31  ;;  %v1120_v37 = vsel %vm3719_vm6, %v1112_v17, %v1113_v15  ;;  %v3721_v17 = vld [vmem:[#allocation23_spill] sm:$0xff]  ;;  %v3284_v30 = vsel %vm3723_vm9, %v1056_v28, %v1057_v7  ;;  %v2043_v28 = vld [vmem:[%s3499_s3 + $0x60] sm:$0xff]   ;;  %v3727_v16 = vld [vmem:[#allocation20_spill] sm:$0xff] }
 0x1b5   : > { %v1295_v53 = vmul.f32 %v3721_v17, %v1120_v37  ;;  %v1129_v3 = vmul.f32 %v2795_v27, %v1120_v37  ;;  %v1196_v60 = vmul.f32 %v3724_v42, %v1120_v37  ;;  %v1161_v27 = vmul.f32 %v2908_v25, %v3284_v30  ;;  %v2045_v25 = vld [vmem:[%s3499_s3 + $0x68] sm:$0xff]   ;;  %1899 = vmatprep.subr.bf16.mxu0 %v2043_v28  ;;  %v3732_v42 = vld [vmem:[#allocation18_spill] sm:$0xff] }
 0x1b6   : > { %1273 = vrot.lane.b32.xlu0 %v1261_v45, %s2070_s14  ;;  %v1119_v41 = vsel %vm3720_vm15, %v1113_v15, %v1114_v14  ;;  %v1058_v18 = vrot.slane %v3249_v31, 7  ;;  %v1228_v46 = vmul.f32 %v3725_v47, %v3284_v30  ;;  %1900 = vmatpush3.bf16.msra.mxu0 %v2044_v26  ;;  %v2048_v45 = vld [vmem:[%s3499_s3 + $0x30] sm:$0xff]   ;;  %v3735_v26 = vld [vmem:[#allocation29_spill] sm:$0xff] }
 0x1b7   : > { %v1296_v10 = vmul.f32 %v3722_v20, %v1119_v41  ;;  %v1197_v51 = vmul.f32 %v2651_v19, %v1119_v41  ;;  %v1130_v0 = vmul.f32 %v2787_v39, %v1119_v41  ;;  %1901 = vmatprep.subr.bf16.mxu0 %v2045_v25  ;;  %v2047_v19 = vld [vmem:[%s3499_s3 + $0x70] sm:$0xff]   ;;  %v2049_v41 = vld [vmem:[%s3499_s3 + $0x78] sm:$0xff]  }
 0x1b8   : > { %1095 = vrot.lane.b32.xlu1 %v1082_v58, %s2068_s10  ;;  %v3311_v4 = vsel %vm3726_vm7, %v1057_v7, %v1058_v18  ;;  %v3728_v7 = vld [vmem:[#allocation30_spill] sm:$0xff] }
 0x1b9   : > { %v1302_v55 = vpack.c.bf16 %v1296_v10, %v1295_v53  ;;  %v1229_v15 = vmul.f32 %v3727_v16, %v3311_v4  ;;  %v1162_v6 = vmul.f32 %v3728_v7, %v3311_v4  ;;  %v3730_v10 = vld [vmem:[#allocation2_spill] sm:$0xff] }
 0x1ba   : > { %1141 = vrot.lane.b32.xlu0 %v1129_v3, %s2069_s25  ;;  %1902 = vmatpush3.bf16.msra.mxu0 %v2046_v59 }
 0x1bb   : > { %1984 = vmatmul.mubr.bf16.vlgmr.msra.gmra.mrb[8].mxu1 %v1302_v55  ;;  %1903 = vmatprep.subr.bf16.mxu0 %v2047_v19  ;;  %v3743_v19 = vld [vmem:[#allocation6_spill] sm:$0xff] }
 0x1bc   : > { %1207 = vrot.lane.b32.xlu1 %v1196_v60, %s2068_s10 }
 0x1be   : > { %1173 = vrot.lane.b32.xlu0 %v1161_v27, %s2070_s14  ;;  %1904 = vmatpush3.bf16.msra.mxu0 %v2048_v45  ;;  %v3746_v45 = vld [vmem:[#allocation39_spill] sm:$0xff] }
 0x1bf   : > { %1905 = vmatprep.subr.bf16.mxu0 %v2049_v41  ;;  %v3749_v41 = vld [vmem:[#allocation40_spill] sm:$0xff] }
 0x1c0   : > { %v1873_v1 = vpop.f32.mrb[12].mxu0  ;;  %1239 = vrot.lane.b32.xlu1 %v1228_v46, %s2069_s25  ;;  %v3737_v46 = vld [vmem:[#allocation5_spill] sm:$0xff] }
 0x1c1   : > { %v1874_v9 = vpop.f32.mrb[13].mxu0 }
 0x1c2   : > { %v1875_v50 = vadd.f32 %v1874_v9, %v1873_v1  ;;  %v1876_v36 = vpop.f32.mrb[14].mxu0  ;;  %1209 = vrot.lane.b32.xlu0 %v1197_v51, %s2068_s10  ;;  %v3738_v1 = vld [vmem:[#allocation26_spill] sm:$0xff]  ;;  %v3739_v9 = vld [vmem:[#allocation27_spill] sm:$0xff] }
 0x1c3   : > { %v1877_v43 = vpop.f32.mrb[15].mxu0 }
 0x1c4   : > { %v974_v48 = vadd.f32 %v1875_v50, %v3129_v62  ;;  %v1878_v5 = vadd.f32 %v1877_v43, %v1876_v36  ;;  %1143 = vrot.lane.b32.xlu1 %v1130_v0, %s2069_s25  ;;  %v3740_v50 = vld [vmem:[#allocation28_spill] sm:$0xff] }
 0x1c6   : > { %v1039_v39 = vadd.f32 %v3109_v52, %v974_v48  ;;  %v977_v37 = vadd.f32 %v1878_v5, %v3129_v62  ;;  %1241 = vrot.lane.b32.xlu0 %v1229_v15, %s2069_s25  ;;  %v3729_v62 = vld [vmem:[#allocation25_spill] sm:$0xff] }
 0x1c7   : > { %v3744_v5 = vld [vmem:[#allocation33_spill] sm:$0xff] }
 0x1c8   : > { %v3333_v49 = vmax.f32 %v1039_v39, 0.0  ;;  %v1042_v58 = vadd.f32 %v3116_v8, %v977_v37  ;;  %1175 = vrot.lane.b32.xlu1 %v1162_v6, %s2070_s14  ;;  %v2050_v8 = vld [vmem:[%s3499_s3 + $0x38] sm:$0xff]   ;;  %v1264_v39 = vmul.f32 %v3746_v45, %v3133_v57  ;;  %v3747_v37 = vld [vmem:[#allocation38_spill] sm:$0xff]  ;;  %v3748_v6 = vld [vmem:[#allocation31_spill] sm:$0xff] }
 0x1c9   : > { %1906 = vmatpush3.bf16.msra.mxu0 %v2050_v8  ;;  %v3751_v8 = vld [vmem:[#allocation32_spill] sm:$0xff] }
 0x1ca   : > { %v3340_v52 = vmax.f32 %v1042_v58, 0.0  ;;  %v1262_v17 = vmul.f32 %v3729_v62, %v3333_v49  ;;  %v1115_v53 = vrot.slane %v3333_v49, 1  ;;  %v1059_v20 = vrot.slane %v3333_v49, 7 }
 0x1cb   : > { %v1084_v16 = vmul.f32 %v3744_v5, %v3333_v49 }
 0x1cc   : > { %1275 = vrot.lane.b32.xlu1 %v1262_v17, %s2070_s14  ;;  %v1077_v12 = vmul.f32 %v3730_v10, %v3340_v52  ;;  %v1118_v3 = vsel %vm3731_vm0, %v1114_v14, %v1115_v53  ;;  %v1116_v55 = vrot.slane %v3340_v52, 1  ;;  %v1060_v11 = vrot.slane %v3340_v52, 7  ;;  %v3750_v17 = vld [vmem:[#allocation35_spill] sm:$0xff] }
 0x1cd   : > { %v1198_v60 = vmul.f32 %v3732_v42, %v1118_v3  ;;  %v1300_v14 = vmul.f32 %v3735_v26, %v3150_v56  ;;  %v3370_v47 = vsel %vm3736_vm3, %v1058_v18, %v1059_v20  ;;  %v1297_v51 = vmul.f32 %v3738_v1, %v1118_v3  ;;  %v3742_v18 = vld [vmem:[#allocation19_spill] sm:$0xff]  ;;  %v3754_v42 = vld [vmem:[#allocation36_spill] sm:$0xff] }
 0x1ce   : > { %1085 = vrot.lane.b32.xlu0 %v1077_v12, %s2068_s10  ;;  %v1124_v27 = vsel %vm3733_vm10, %v1116_v55, %v1109_v29  ;;  %v1117_v28 = vsel %vm3734_vm11, %v1115_v53, %v1116_v55  ;;  %v1068_v56 = vsel %vm3741_vm8, %v1060_v11, %v1053_v33  ;;  %v1230_v43 = vmul.f32 %v3742_v18, %v3370_v47  ;;  %v3745_v33 = vld [vmem:[#allocation34_spill] sm:$0xff] }
 0x1cf   : > { %v1125_v25 = vmul.f32 %v3737_v46, %v1124_v27  ;;  %v1298_v59 = vmul.f32 %v3739_v9, %v1117_v28  ;;  %v1299_v36 = vmul.f32 %v3740_v50, %v1124_v27  ;;  %v1157_v48 = vmul.f32 %v3743_v19, %v1068_v56 }
 0x1d0   : > { %1211 = vrot.lane.b32.xlu1 %v1198_v60, %s2068_s10  ;;  %v1083_v15 = vmul.f32 %v3745_v33, %v3249_v31  ;;  %v1131_v7 = vmul.f32 %v3747_v37, %v1118_v3  ;;  %v1200_v58 = vmul.f32 %v3748_v6, %v1124_v27  ;;  %v1263_v62 = vmul.f32 %v3749_v41, %v3340_v52  ;;  %v3753_v3 = vld [vmem:[#allocation37_spill] sm:$0xff] }
 0x1d1   : > { %v1303_v29 = vpack.c.bf16 %v1298_v59, %v1297_v51  ;;  %v1304_v0 = vpack.c.bf16 %v1300_v14, %v1299_v36  ;;  %v1232_v53 = vmul.f32 %v3750_v17, %v1068_v56  ;;  %v1199_v10 = vmul.f32 %v3751_v8, %v1117_v28  ;;  %v3755_v27 = vld [vmem:[#allocation41_spill] sm:$0xff] }
 0x1d2   : > { %1133 = vrot.lane.b32.xlu0 %v1125_v25, %s2069_s25  ;;  %v3408_v12 = vsel %vm3752_vm13, %v1059_v20, %v1060_v11  ;;  %v1132_v55 = vmul.f32 %v3753_v3, %v1117_v28  ;;  %v1163_v20 = vmul.f32 %v3756_v2, %v3370_v47  ;;  %v3757_v11 = vld [vmem:[#allocation43_spill] sm:$0xff]  ;;  %v1071_v51 = vmul.f32 %v3047_v24, %v3161_v54 }
 0x1d3   : > { %1987 = vmatprep.mubr.bf16.mxu1 %v1303_v29  ;;  %v1231_v60 = vmul.f32 %v3754_v42, %v3408_v12  ;;  %v1164_v26 = vmul.f32 %v3755_v27, %v3408_v12  ;;  %v1070_v14 = vmul.f32 %v3757_v11, %v1068_v56  ;;  %v1072_v37 = vmul.f32 %v3042_v22, %v3206_v38 }
 0x1d4   : > { %1988 = vmatmul.mubr.bf16.gmra.mrb[12].mxu1 %v1304_v0  ;;  %1243 = vrot.lane.b32.xlu1 %v1230_v43, %s2069_s25  ;;  %v1073_v38 = vmul.f32 %v3063_v35, %v3221_v21  ;;  %v3758_v35 = vld [vmem:[#allocation44_spill] sm:$0xff] }
 0x1d5   : > { %v1069_v21 = vmul.f32 %v3758_v35, %v3408_v12 }
 0x1d6   : > { %1165 = vrot.lane.b32.xlu0 %v1157_v48, %s2070_s14 }
 0x1d8   : > { %1099 = vrot.lane.b32.xlu1 %v1084_v16, %s2068_s10 }
 0x1da   : > { %1097 = vrot.lane.b32.xlu0 %v1083_v15, %s2068_s10 }
 0x1dc   : > { %1279 = vrot.lane.b32.xlu1 %v1264_v39, %s2070_s14 }
 0x1de   : > { %1145 = vrot.lane.b32.xlu0 %v1131_v7, %s2069_s25 }
 0x1e0   : > { %1215 = vrot.lane.b32.xlu1 %v1200_v58, %s2068_s10 }
 0x1e2   : > { %1277 = vrot.lane.b32.xlu0 %v1263_v62, %s2070_s14 }
 0x1e4   : > { %1247 = vrot.lane.b32.xlu1 %v1232_v53, %s2069_s25 }
 0x1e6   : > { %1213 = vrot.lane.b32.xlu0 %v1199_v10, %s2068_s10 }
 0x1e8   : > { %1147 = vrot.lane.b32.xlu1 %v1132_v55, %s2069_s25 }
 0x1ea   : > { %1245 = vrot.lane.b32.xlu0 %v1231_v60, %s2069_s25 }
 0x1ec   : > { %1179 = vrot.lane.b32.xlu1 %v1164_v26, %s2070_s14 }
 0x1ee   : > { %1177 = vrot.lane.b32.xlu0 %v1163_v20, %s2070_s14  ;;  %v1074_v20 = vmul.f32 %v3058_v40, %v3284_v30 }
 0x1f6   : > { %v1088_v28 = vpop.permute.xlu1 %1087 }
 0x1f7   : > { %v1102_v46 = vadd.f32 %v1088_v28, %v1070_v14 }
 0x1f8   : > { %v1266_v25 = vpop.permute.xlu0 %1265 }
 0x1fb   : > { %v1136_v1 = vpop.permute.xlu1 %1135 }
 0x1fc   : > { %v3425_v9 = vadd.f32 %v1136_v1, %v1102_v46  ;;  %v1090_v59 = vpop.permute.xlu0 %1089 }
 0x1fd   : > { %v1103_v50 = vadd.f32 %v1090_v59, %v1071_v51 }
 0x1ff   : > { %v3427_v29 = vpop.permute.xlu1 %1167 }
 0x200   : > { %v1202_v36 = vpop.permute.xlu0 %1201 }
 0x201   : > { %v1217_v5 = vadd.f32 %v1202_v36, %v3133_v57 }
 0x204   : > { %v1234_v0 = vpop.permute.xlu0 %1233 }
 0x205   : > { %v1249_v33 = vadd.f32 %v1234_v0, %v1217_v5 }
 0x207   : > { %v1281_v39 = vadd.f32 %v1266_v25, %v1249_v33 }
 0x20e   : > { %v1268_v18 = vpop.permute.xlu1 %1267 }
 0x210   : > { %v1270_v43 = vpop.permute.xlu0 %1269 }
 0x212   : > { %v1092_v19 = vpop.permute.xlu1 %1091 }
 0x213   : > { %v1104_v58 = vadd.f32 %v1092_v19, %v1072_v37 }
 0x214   : > { %v1094_v48 = vpop.permute.xlu0 %1093 }
 0x215   : > { %v1105_v28 = vadd.f32 %v1094_v48, %v1073_v38 }
 0x216   : > { %v1204_v56 = vpop.permute.xlu1 %1203 }
 0x217   : > { %v1218_v15 = vadd.f32 %v1204_v56, %v3135_v61 }
 0x218   : > { %v1138_v16 = vpop.permute.xlu0 %1137 }
 0x219   : > { %v1151_v17 = vadd.f32 %v1138_v16, %v1103_v50 }
 0x21a   : > { %v1236_v24 = vpop.permute.xlu1 %1235 }
 0x21b   : > { %v1250_v54 = vadd.f32 %v1236_v24, %v1218_v15 }
 0x21c   : > { %v1170_v45 = vpop.permute.xlu0 %1169 }
 0x21d   : > { %v1282_v7 = vadd.f32 %v1268_v18, %v1250_v54  ;;  %v1183_v8 = vadd.f32 %v1170_v45, %v1151_v17 }
 0x21e   : > { %v1140_v6 = vpop.permute.xlu1 %1139 }
 0x21f   : > { %v1289_v41 = vpack.c.bf16 %v1282_v7, %v1281_v39  ;;  %v1152_v53 = vadd.f32 %v1140_v6, %v1104_v58  ;;  %v1182_v39 = vadd.f32 %v3427_v29, %v3425_v9 }
 0x220   : > { %v1206_v62 = vpop.permute.xlu0 %1205 }
 0x221   : > { %1536 = vmatprep.mubr.bf16.mxu0 %v1289_v41  ;;  %v1219_v40 = vadd.f32 %v1206_v62, %v3177_v32 }
 0x222   : > { %v1172_v57 = vpop.permute.xlu1 %1171 }
 0x223   : > { %v1184_v10 = vadd.f32 %v1172_v57, %v1152_v53 }
 0x224   : > { %v1238_v3 = vpop.permute.xlu0 %1237 }
 0x225   : > { %v1190_v61 = vpack.c.bf16 %v1184_v10, %v1183_v8  ;;  %v1251_v33 = vadd.f32 %v1238_v3, %v1219_v40 }
 0x226   : > { %v1272_v55 = vpop.permute.xlu1 %1271 }
 0x227   : > { %v1283_v7 = vadd.f32 %v1270_v43, %v1251_v33  ;;  %v2052_v33 = vld [vmem:[%s2138_s9] sm:$0xff] }
 0x228   : > { %v1274_v42 = vpop.permute.xlu0 %1273 }
 0x22a   : > { %v1096_v60 = vpop.permute.xlu1 %1095 }
 0x22b   : > { %v1106_v46 = vadd.f32 %v1096_v60, %v1074_v20  ;;  %v1076_v60 = vmul.f32 %v3074_v13, %v3370_v47 }
 0x22c   : > { %v1142_v27 = vpop.permute.xlu0 %1141 }
 0x22d   : > { %v1153_v25 = vadd.f32 %v1142_v27, %v1105_v28  ;;  %v1075_v27 = vmul.f32 %v3079_v44, %v3311_v4 }
 0x22e   : > { %v1208_v26 = vpop.permute.xlu1 %1207 }
 0x22f   : > { %v1220_v56 = vadd.f32 %v1208_v26, %v3180_v34 }
 0x230   : > { %v1174_v2 = vpop.permute.xlu0 %1173 }
 0x231   : > { %v1185_v59 = vadd.f32 %v1174_v2, %v1153_v25 }
 0x232   : > { %v1240_v22 = vpop.permute.xlu1 %1239 }
 0x233   : > { %v1252_v30 = vadd.f32 %v1240_v22, %v1220_v56 }
 0x234   : > { %v1210_v11 = vpop.permute.xlu0 %1209 }
 0x235   : > { %v1284_v54 = vadd.f32 %v1272_v55, %v1252_v30  ;;  %v1221_v12 = vadd.f32 %v1210_v11, %v3240_v63 }
 0x236   : > { %v1144_v14 = vpop.permute.xlu1 %1143 }
 0x237   : > { %v1154_v1 = vadd.f32 %v1144_v14, %v1106_v46  ;;  %v1290_v62 = vpack.c.bf16 %v1284_v54, %v1283_v7 }
 0x238   : > { %v1242_v36 = vpop.permute.xlu0 %1241 }
 0x239   : > { %v1253_v17 = vadd.f32 %v1242_v36, %v1221_v12 }
 0x23a   : > { %v1176_v51 = vpop.permute.xlu1 %1175 }
 0x23b   : > { %v1186_v50 = vadd.f32 %v1176_v51, %v1154_v1  ;;  %v1285_v10 = vadd.f32 %v1274_v42, %v1253_v17 }
 0x23d   : > { %v1191_v0 = vpack.c.bf16 %v1186_v50, %v1185_v59 }
 0x23e   : > { %v1276_v18 = vpop.permute.xlu1 %1275 }
 0x240   : > { %v1086_v19 = vpop.permute.xlu0 %1085 }
 0x241   : > { %v1101_v16 = vadd.f32 %v1086_v19, %v1069_v21  ;;  %v3458_v19 = vld [vmem:[%s3500_s4] ss:$0 sm:$0xff] }
 0x242   : > { %v1212_v5 = vpop.permute.xlu1 %1211 }
 0x243   : > { %v1222_v34 = vadd.f32 %v1212_v5, %v3249_v31 }
 0x244   : > { %v1134_v48 = vpop.permute.xlu0 %1133 }
 0x245   : > { %v1149_v24 = vadd.f32 %v1134_v48, %v1101_v16 }
 0x246   : > { %v1244_v15 = vpop.permute.xlu1 %1243 }
 0x247   : > { %v1254_v32 = vadd.f32 %v1244_v15, %v1222_v34 }
 0x248   : > { %v1166_v45 = vpop.permute.xlu0 %1165 }
 0x249   : > { %v1181_v37 = vadd.f32 %v1166_v45, %v1149_v24  ;;  %v1286_v57 = vadd.f32 %v1276_v18, %v1254_v32 }
 0x24a   : > { %v1100_v6 = vpop.permute.xlu1 %1099 }
 0x24b   : > { %v1189_v58 = vpack.c.bf16 %v1182_v39, %v1181_v37  ;;  %v1291_v29 = vpack.c.bf16 %v1286_v57, %v1285_v10  ;;  %v1108_v22 = vadd.f32 %v1100_v6, %v1076_v60  ;;  %v2053_v37 = vld [vmem:[%s2138_s9 + $0x8] sm:$0xff] }
 0x24c   : > { %v1098_v41 = vpop.permute.xlu0 %1097 }
 0x24d   : > { %1537 = vmatmul.mubr.bf16.vlgmr.msra.gmra.mrb[16].mxu0 %v1189_v58  ;;  %v1107_v38 = vadd.f32 %v1098_v41, %v1075_v27 }
 0x24e   : > { %1544 = vmatprep.mubr.bf16.mxu0 %v1290_v62  ;;  %v1280_v53 = vpop.permute.xlu1 %1279 }
 0x250   : > { %v1146_v8 = vpop.permute.xlu0 %1145 }
 0x251   : > { %v1155_v11 = vadd.f32 %v1146_v8, %v1107_v38 }
 0x252   : > { %v1216_v3 = vpop.permute.xlu1 %1215 }
 0x253   : > { %v1224_v55 = vadd.f32 %v1216_v3, %v3340_v52 }
 0x254   : > { %v1278_v9 = vpop.permute.xlu0 %1277 }
 0x255   : > { %1545 = vmatmul.mubr.bf16.gmra.mrb[20].mxu0 %v1190_v61 }
 0x256   : > { %1552 = vmatprep.mubr.bf16.mxu0 %v1291_v29  ;;  %v1248_v31 = vpop.permute.xlu1 %1247  ;;  %v2055_v29 = vld [vmem:[%s2138_s9 + $0x18] sm:$0xff] }
 0x257   : > { %v1256_v26 = vadd.f32 %v1248_v31, %v1224_v55 }
 0x258   : > { %v1214_v43 = vpop.permute.xlu0 %1213 }
 0x259   : > { %v1223_v2 = vadd.f32 %v1214_v43, %v3333_v49  ;;  %v1288_v14 = vadd.f32 %v1280_v53, %v1256_v26  ;;  %v2054_v53 = vld [vmem:[%s2138_s9 + $0x10] sm:$0xff] }
 0x25a   : > { %v1148_v63 = vpop.permute.xlu1 %1147 }
 0x25b   : > { %v1156_v28 = vadd.f32 %v1148_v63, %v1108_v22  ;;  %v2056_v22 = vld [vmem:[%s2138_s9 + $0x20] sm:$0xff] }
 0x25c   : > { %v1246_v42 = vpop.permute.xlu0 %1245 }
 0x25d   : > { %v1255_v20 = vadd.f32 %v1246_v42, %v1223_v2  ;;  %1553 = vmatmul.mubr.bf16.gmra.mrb[24].mxu0 %v1191_v0 }
 0x25e   : > { %v1180_v61 = vpop.permute.xlu1 %1179 }
 0x25f   : > { %v1287_v52 = vadd.f32 %v1278_v9, %v1255_v20  ;;  %v1188_v25 = vadd.f32 %v1180_v61, %v1156_v28  ;;  %v2057_v28 = vld [vmem:[%s2138_s9 + $0x28] sm:$0xff] }
 0x260   : > { %v1178_v46 = vpop.permute.xlu0 %1177 }
 0x261   : > { %v1187_v1 = vadd.f32 %v1178_v46, %v1155_v11  ;;  %v1292_v13 = vpack.c.bf16 %v1288_v14, %v1287_v52 }
 0x263   : > { %v1192_v47 = vpack.c.bf16 %v1188_v25, %v1187_v1  ;;  %1560 = vmatprep.mubr.bf16.mxu0 %v1292_v13 }
 0x265   : > { %1561 = vmatmul.mubr.bf16.gmra.mrb[28].mxu0 %v1192_v47 }
 0x28e   : > { %v1985_v44 = vpop.f32.mrb[8].mxu1 }
 0x28f   : > { %v1603_v4 = vpop.f32.mrb[9].mxu1 }
 0x290   : > { %v1986_v49 = vpop.f32.mrb[10].mxu1 }
 0x291   : > { %v1606_v51 = vpop.f32.mrb[11].mxu1 }
 0x2a7   : > { %v3451_v59 = vpop.f32.mrb[12].mxu1 }
 0x2a8   : > { %v1619_v50 = vpop.f32.mrb[13].mxu1 }
 0x2a9   : > { %v3453_v36 = vpop.f32.mrb[14].mxu1 }
 0x2aa   : > { %v1622_v0 = vpop.f32.mrb[15].mxu1 }
 0x320   : > { %v1907_v18 = vpop.f32.mrb[16].mxu0 }
 0x321   : > { %v1908_v56 = vpop.f32.mrb[17].mxu0 }
 0x322   : > { %v1909_v5 = vadd.f32 %v1908_v56, %v1907_v18  ;;  %v1910_v35 = vpop.f32.mrb[18].mxu0 }
 0x323   : > { %v1911_v21 = vpop.f32.mrb[19].mxu0 }
 0x324   : > { %v1539_v40 = vadd.f32 %v1909_v5, %v3458_v19  ;;  %v1912_v30 = vadd.f32 %v1911_v21, %v1910_v35 }
 0x326   : > { %v1604_v48 = vadd.f32 %v1603_v4, %v1539_v40  ;;  %v1542_v16 = vadd.f32 %v1912_v30, %v3458_v19 }
 0x328   : > { %v1634_v15 = vadd.f32 %v2052_v33, %v1604_v48  ;;  %v1607_v24 = vadd.f32 %v1606_v51, %v1542_v16  ;;  %v1913_v54 = vpop.f32.mrb[20].mxu0  ;;  %v2058_v51 = vld [vmem:[%s2138_s9 + $0x30] sm:$0xff] }
 0x329   : > { %v1914_v45 = vpop.f32.mrb[21].mxu0 }
 0x32a   : > { %v1642_v39 = vmax.f32 %v1634_v15, 0.0  ;;  %v1635_v7 = vadd.f32 %v2053_v37, %v1607_v24  ;;  %v1915_v34 = vadd.f32 %v1914_v45, %v1913_v54  ;;  %v1916_v6 = vpop.f32.mrb[22].mxu0 }
 0x32b   : > { %v1917_v58 = vpop.f32.mrb[23].mxu0 }
 0x32c   : > { %1650 = vst [vmem:[%s3468_s7] sm:$0xff] %v1642_v39  ;;  %v1643_v12 = vmax.f32 %v1635_v7, 0.0  ;;  %v1547_v32 = vadd.f32 %v1915_v34, %v3458_v19  ;;  %v1918_v41 = vadd.f32 %v1917_v58, %v1916_v6 }
 0x32e   : > { %1651 = vst [vmem:[%s3468_s7 + $0x8] sm:$0xff] %v1643_v12  ;;  %v1612_v62 = vadd.f32 %v1985_v44, %v1547_v32  ;;  %v1550_v17 = vadd.f32 %v1918_v41, %v3458_v19 }
 0x330   : > { %v1636_v57 = vadd.f32 %v2054_v53, %v1612_v62  ;;  %v1615_v8 = vadd.f32 %v1986_v49, %v1550_v17  ;;  %v1919_v10 = vpop.f32.mrb[24].mxu0 }
 0x331   : > { %v1920_v3 = vpop.f32.mrb[25].mxu0 }
 0x332   : > { %v1644_v9 = vmax.f32 %v1636_v57, 0.0  ;;  %v1637_v31 = vadd.f32 %v2055_v29, %v1615_v8  ;;  %v1921_v43 = vadd.f32 %v1920_v3, %v1919_v10  ;;  %v1922_v55 = vpop.f32.mrb[26].mxu0 }
 0x333   : > { %v1923_v63 = vpop.f32.mrb[27].mxu0 }
 0x334   : > { %1652 = vst [vmem:[%s3468_s7 + $0x10] sm:$0xff] %v1644_v9  ;;  %v1645_v60 = vmax.f32 %v1637_v31, 0.0  ;;  %v1555_v27 = vadd.f32 %v1921_v43, %v3458_v19  ;;  %v1924_v26 = vadd.f32 %v1923_v63, %v1922_v55 }
 0x336   : > { %1653 = vst [vmem:[%s3468_s7 + $0x18] sm:$0xff] %v1645_v60  ;;  %v1620_v2 = vadd.f32 %v1619_v50, %v1555_v27  ;;  %v1558_v42 = vadd.f32 %v1924_v26, %v3458_v19 }
 0x338   : > { %v1638_v38 = vadd.f32 %v2056_v22, %v1620_v2  ;;  %v1623_v20 = vadd.f32 %v1622_v0, %v1558_v42  ;;  %v1925_v61 = vpop.f32.mrb[28].mxu0 }
 0x339   : > { %v1926_v11 = vpop.f32.mrb[29].mxu0 }
 0x33a   : > { %v1646_v14 = vmax.f32 %v1638_v38, 0.0  ;;  %v1639_v52 = vadd.f32 %v2057_v28, %v1623_v20  ;;  %v1927_v46 = vadd.f32 %v1926_v11, %v1925_v61  ;;  %v1928_v25 = vpop.f32.mrb[30].mxu0 }
 0x33b   : > { %v1929_v1 = vpop.f32.mrb[31].mxu0 }
 0x33c   : > { %1654 = vst [vmem:[%s3468_s7 + $0x20] sm:$0xff] %v1646_v14  ;;  %v1647_v13 = vmax.f32 %v1639_v52, 0.0  ;;  %v1563_v47 = vadd.f32 %v1927_v46, %v3458_v19  ;;  %v1930_v44 = vadd.f32 %v1929_v1, %v1928_v25 }
 0x33e   : > { %1655 = vst [vmem:[%s3468_s7 + $0x28] sm:$0xff] %v1647_v13  ;;  %v1628_v4 = vadd.f32 %v3451_v59, %v1563_v47  ;;  %v1566_v49 = vadd.f32 %v1930_v44, %v3458_v19 }
 0x340   : > { %v1640_v50 = vadd.f32 %v2058_v51, %v1628_v4  ;;  %v1631_v0 = vadd.f32 %v3453_v36, %v1566_v49 }
 0x342   : > { %v1648_v18 = vmax.f32 %v1640_v50, 0.0  ;;  %v1641_v56 = vadd.f32 %v3082_v23, %v1631_v0 }
 0x344   : > { %1656 = vst [vmem:[%s3468_s7 + $0x30] sm:$0xff] %v1648_v18  ;;  %v1649_v5 = vmax.f32 %v1641_v56, 0.0 }
 0x346   : > { %1657 = vst [vmem:[%s3468_s7 + $0x38] sm:$0xff] %v1649_v5 }
 0x347 PF: > { %s15_s18 = sadd.s32 1, %s2065_s18  }
 0x348   : > { %p12_p4 = scmp.ge.s32.totalorder %s15_s18, 4  }
 0x34a   :  { %14 = sbr.rel (!%p12_p4) target bundleno = 1 (0x1), region = 70 }

</bundles_post_ra>
